<compile_context>
chip_gen: v7x
topology: tpu7x:2x2x1
jax: 0.10.0
libtpu: 0.0.40
codegen_flags: <defaults>
</compile_context>

<pallas_src>
import hashlib
import math

import jax
import jax.numpy as jnp
import numpy as np
from jax.experimental import pallas as pl
from jax.experimental.pallas import tpu as pltpu

KSIZE = 10
STRIDE = 10
ROLL_SHIFT = 10
PARAM_MAG_WEIGHT = 20.0
N_AUG = 5


def calculate_p_value(N, M):
    # binom.sf(N - 1, M, 0.5) == P(X >= N), X ~ Binomial(M, 0.5)
    # TODO(synk): scipy.stats.binom has no Pallas equivalent; exact host-side sum instead.
    N = max(int(N), 0)
    return sum(math.comb(M, k) for k in range(N, M + 1)) / (2.0 ** M)


def make_watermark_forward(conv_w, conv_b, mask, image_shape):
    """Builds all constant operands once (numpy) and returns a jitted forward(cat_t, param, noise)."""
    C, H, W = image_shape
    K, S = KSIZE, STRIDE
    CH = C * H
    CHd, Wd = CH - 2, W - 2
    OH = (H - 2 - K) // S + 1
    OW = (W - 2 - K) // S + 1
    n_results = N_AUG * OH * OW
    n_param = C * H * W

    w_np = np.asarray(conv_w, dtype=np.float32).reshape(C, K, K)

    # ---------------- host-built constants (built ONCE, closed over) ----------------
    # Row permutations (left-multiplication, per channel block): flip-H and roll rows by
    # +ROLL_SHIFT, stacked vertically so BOTH are produced by a single MXU matmul.
    fh = np.zeros((CH, CH), np.float32)
    rh = np.zeros((CH, CH), np.float32)
    for c in range(C):
        for h in range(H):
            fh[c * H + h, c * H + (H - 1 - h)] = 1.0
            rh[c * H + h, c * H + (h - ROLL_SHIFT) % H] = 1.0
    prow = np.concatenate([fh, rh], axis=0)                     # (2*CH, CH)

    # Column permutations (right-multiplication): flip-W on top, roll-W below (one constant).
    jw = np.zeros((W, W), np.float32)
    rw = np.zeros((W, W), np.float32)
    for w in range(W):
        jw[W - 1 - w, w] = 1.0
        rw[(w - ROLL_SHIFT) % W, w] = 1.0
    pcol = np.concatenate([jw, rw], axis=0)                     # (2*W, W)

    # Expanded conv weights over the (CH-2, Wd) diff slab: row c*H+h, col wc gets
    # w[c, h%K, wc%K]; channel-seam rows (h >= OH*S) stay 0 and are never selected by grow.
    # TODO(synk): this seam-row skip assumes KSIZE == STRIDE and (H-2) >= OH*S (true here).
    wexp = np.zeros((CHd, Wd), np.float32)
    grow = np.zeros((OH, CHd), np.float32)                      # row block-sum selector
    for r in range(CHd):
        c, h = r // H, r % H
        if h < OH * S:
            wexp[r, : OW * S] = np.tile(w_np[c, h % K, :], OW)
            grow[h // S, r] = 1.0
    gcol = np.zeros((Wd, OW), np.float32)                       # column block-sum selector
    for wc in range(OW * S):
        gcol[wc, wc // S] = 1.0

    # Batched (5-augmentation, lane-concatenated) versions.
    wexp5 = np.tile(wexp, (1, N_AUG))                           # (CHd, 5*Wd)
    gcol5 = np.kron(np.eye(N_AUG, dtype=np.float32), gcol)      # (5*Wd, 5*OW) block-diagonal

    # Mask is (1, new_width, new_height) with new_width from image.shape[1]=H and
    # new_height from image.shape[2]=W, i.e. exactly (OH, OW) — faithful to the module.
    maskf = np.asarray(mask, dtype=np.float32).reshape(OH, OW)
    maskf5 = np.tile(maskf, (1, N_AUG))                         # (OH, 5*OW)

    # Small constants packed into one array (one DMA): grow at rows [0, OH),
    # tiled mask at 8-aligned rows [8, 8+OH).
    small = np.zeros((16, CHd), np.float32)
    small[0:OH, 0:CHd] = grow
    small[8:8 + OH, 0:N_AUG * OW] = maskf5

    bias = np.asarray(conv_b, dtype=np.float32).reshape(1, 1)

    consts = tuple(jnp.asarray(a) for a in (prow, pcol, wexp5, gcol5, small, bias))

    inv_n_results = 1.0 / float(n_results)
    inv_n_param = 1.0 / float(n_param)
    inv_255 = 1.0 / 255.0

    def kernel(img_ref, param_ref, noise_ref, prow_ref, pcol_ref, wexp5_ref,
               gcol5_ref, small_ref, bias_ref, loss_ref, matches_ref):
        def diff(a):
            # (CH, W) slab -> (CHd, Wd) stride-1 diff; seam rows are junk but zero-weighted.
            return a[0:CHd, 0:Wd] - a[2:CH, 2:W]

        x = img_ref[...] + param_ref[...]                       # new_cat, (CH, W)

        # --- augmentation block A: identity + noise (noise diff derived from identity diff;
        #     the 5th augmented slab is never materialized) ---
        d0 = diff(x)                                            # identity
        dn = d0 + (noise_ref[0:CHd, 0:Wd] - noise_ref[2:CH, 2:W]) * inv_255   # + noise/255
        d_a = jnp.concatenate([d0, dn], axis=1)                 # (CHd, 2*Wd)

        # --- augmentation block B: flip-W, flip-H, roll(10,10) ---
        d2 = diff(jnp.dot(x, pcol_ref[0:W, :],
                          preferred_element_type=jnp.float32))  # flip-W
        y = jnp.dot(prow_ref[...], x,
                    preferred_element_type=jnp.float32)         # (2*CH, W): flip-H rows, roll-H rows
        d1 = y[0:CHd, 0:Wd] - y[2:CH, 2:W]                      # flip-H (diff taken directly on y)
        xr = jnp.dot(y[CH:2 * CH, :], pcol_ref[W:2 * W, :],
                     preferred_element_type=jnp.float32)        # roll rows then roll cols
        d3 = diff(xr)
        d_b = jnp.concatenate([d1, d2, d3], axis=1)             # (CHd, 3*Wd)

        # --- batched conv: ONE multiply + TWO matmuls for all 5 augmentations ---
        D = jnp.concatenate([d_a, d_b], axis=1)                 # (CHd, 5*Wd), aug order [id,noise,fH,fW,roll]
        M = D * wexp5_ref[...]                                  # VPU elementwise, 150/256 lanes
        r0 = jnp.dot(small_ref[0:OH, 0:CHd], M,
                     preferred_element_type=jnp.float32)        # (OH, 5*Wd)
        res = jnp.dot(r0, gcol5_ref[...],
                      preferred_element_type=jnp.float32) + bias_ref[0, 0]    # (OH, 5*OW)

        maskf5_v = small_ref[8:8 + OH, 0:N_AUG * OW]            # (OH, 5*OW)
        sign5 = 1.0 - 2.0 * maskf5_v                            # == -(mask*2 - 1)

        loss_sum = jnp.sum(sign5 * jnp.clip(res, -0.5, 0.5))
        match = jnp.where(res > 0.0, maskf5_v, 1.0 - maskf5_v)  # per-position match indicator

        min_matches = None
        for a in range(N_AUG):                                  # static unroll (5), order-independent min
            cnt = jnp.sum(match[:, a * OW:(a + 1) * OW])
            min_matches = cnt if min_matches is None else jnp.minimum(min_matches, cnt)

        param_l1 = jnp.sum(jnp.abs(param_ref[...]))
        loss_ref[0, 0] = (loss_sum * inv_n_results
                          + PARAM_MAG_WEIGHT * param_l1 * inv_n_param)
        matches_ref[0, 0] = min_matches

    vmem = pl.BlockSpec(memory_space=pltpu.MemorySpace.VMEM)
    smem = pl.BlockSpec(memory_space=pltpu.MemorySpace.SMEM)

    fused = pl.pallas_call(
        kernel,
        out_shape=(
            jax.ShapeDtypeStruct((1, 1), jnp.float32),          # loss
            jax.ShapeDtypeStruct((1, 1), jnp.float32),          # min matches
        ),
        in_specs=[vmem] * 8 + [smem],
        out_specs=(smem, smem),
    )

    @jax.jit
    def forward(cat_t, param, noise):
        img2d = cat_t.reshape(CH, W).astype(jnp.float32)        # free leading-dim merge
        param2d = param.reshape(CH, W).astype(jnp.float32)
        noise2d = noise.reshape(CH, W).astype(jnp.float32)
        loss, matches = fused(img2d, param2d, noise2d, *consts)
        return loss[0, 0], matches[0, 0]

    return forward


def forward_ref(cat_t, param, conv_w, conv_b, mask, noise):
    """Pure-JAX reference (mirrors the PyTorch forward) for a correctness check."""
    new_cat = cat_t + param
    augs = jnp.stack(
        [
            new_cat,
            jnp.flip(new_cat, axis=1),
            jnp.flip(new_cat, axis=2),
            jnp.roll(new_cat, shift=(ROLL_SHIFT, ROLL_SHIFT), axis=(1, 2)),
            new_cat + noise / 255.0,
        ],
        axis=0,
    )
    diff = augs[:, :, :-2, :-2] - augs[:, :, 2:, 2:]
    result = jax.lax.conv_general_dilated(
        diff, conv_w, (STRIDE, STRIDE), "VALID",
        dimension_numbers=("NCHW", "OIHW", "NCHW"),
        precision=jax.lax.Precision.HIGHEST,
    ) + conv_b.reshape(1, 1, 1, 1)
    maskf = mask[None].astype(jnp.float32)                      # (1,1,oh,ow)
    loss = -(maskf * 2.0 - 1.0) * jnp.clip(result, -0.5, 0.5)
    sign = (result > 0.0).astype(jnp.float32)
    matches = jnp.min(jnp.sum((sign == maskf).astype(jnp.float32), axis=(1, 2, 3)))
    total = loss.mean() + PARAM_MAG_WEIGHT * jnp.abs(param).mean()
    return total, matches


if __name__ == "__main__":
    key = jax.random.PRNGKey(0)
    k_img, k_noise = jax.random.split(key)

    # image / cat_t: (C=3, H=32, W=32) -> conv output spatial (3, 3)
    image = jax.random.uniform(k_img, (3, 32, 32), dtype=jnp.float32)

    # deterministic, password-derived parameter init (mirrors __init__'s sha256 seeding)
    password = "hunter2"
    seed = int(hashlib.sha256(password.encode("utf-8")).hexdigest(), 16) % (2 ** 32)
    pkey = jax.random.PRNGKey(seed)
    kw, kb, km = jax.random.split(pkey, 3)
    conv_w = jax.random.normal(kw, (1, 3, KSIZE, KSIZE), dtype=jnp.float32) * 0.05
    conv_b = jax.random.normal(kb, (1,), dtype=jnp.float32) * 0.05

    new_width = (image.shape[1] - 2 - KSIZE) // STRIDE + 1
    new_height = (image.shape[2] - 2 - KSIZE) // STRIDE + 1
    mask = jax.random.randint(km, (1, new_width, new_height), 0, 2, dtype=jnp.int32)

    param = jnp.zeros_like(image)                               # torch.zeros_like(image)
    noise = jax.random.normal(k_noise, image.shape, dtype=jnp.float32)  # randn_like

    forward = make_watermark_forward(conv_w, conv_b, mask, image.shape)   # constants built once
    loss, matches = forward(image, param, noise)
    loss = jax.block_until_ready(loss)
    matches = jax.block_until_ready(matches)

    # correctness check against pure-JAX reference
    loss_r, matches_r = forward_ref(image, param, conv_w, conv_b, mask, noise)
    np.testing.assert_allclose(np.asarray(loss), np.asarray(loss_r), rtol=1e-3, atol=1e-4)
    m_pal = int(round(float(matches)))
    m_ref = int(round(float(matches_r)))
    assert m_pal == m_ref, (m_pal, m_ref)

    p_value = calculate_p_value(m_pal, new_width * new_height)
    assert 0.0 <= p_value <= 1.0

    print("KERNEL_OK")
</pallas_src>

<mosaic_0001>
module attributes {stable_mosaic.version = 11 : i64} {
  func.func @kernel(%arg0: memref<96x32xf32, #tpu.memory_space<vmem>>, %arg1: memref<96x32xf32, #tpu.memory_space<vmem>>, %arg2: memref<96x32xf32, #tpu.memory_space<vmem>>, %arg3: memref<192x96xf32, #tpu.memory_space<vmem>>, %arg4: memref<64x32xf32, #tpu.memory_space<vmem>>, %arg5: memref<94x150xf32, #tpu.memory_space<vmem>>, %arg6: memref<150x15xf32, #tpu.memory_space<vmem>>, %arg7: memref<16x94xf32, #tpu.memory_space<vmem>>, %arg8: memref<1x1xf32, #tpu.memory_space<smem>>, %arg9: memref<1x1xf32, #tpu.memory_space<smem>>, %arg10: memref<1x1xf32, #tpu.memory_space<smem>>) attributes {dimension_semantics = [], scalar_prefetch = 0 : i64, scratch_operands = 0 : i64, tpu.core_type = #tpu.core_type<tc>} {
    %c0 = arith.constant 0 : index
    %c0_0 = arith.constant 0 : index
    %0 = vector.load %arg0[%c0, %c0_0] : memref<96x32xf32, #tpu.memory_space<vmem>>, vector<96x32xf32>
    %c0_1 = arith.constant 0 : index
    %c0_2 = arith.constant 0 : index
    %1 = vector.load %arg1[%c0_1, %c0_2] : memref<96x32xf32, #tpu.memory_space<vmem>>, vector<96x32xf32>
    %2 = arith.addf %0, %1 : vector<96x32xf32>
    %3 = vector.extract_strided_slice %2 {offsets = [0, 0], sizes = [94, 30], strides = [1, 1]} : vector<96x32xf32> to vector<94x30xf32>
    %4 = vector.extract_strided_slice %2 {offsets = [2, 2], sizes = [94, 30], strides = [1, 1]} : vector<96x32xf32> to vector<94x30xf32>
    %5 = arith.subf %3, %4 : vector<94x30xf32>
    %c0_3 = arith.constant 0 : index
    %c0_4 = arith.constant 0 : index
    %6 = vector.load %arg2[%c0_3, %c0_4] : memref<96x32xf32, #tpu.memory_space<vmem>>, vector<94x30xf32>
    %c2 = arith.constant 2 : index
    %c2_5 = arith.constant 2 : index
    %7 = vector.load %arg2[%c2, %c2_5] : memref<96x32xf32, #tpu.memory_space<vmem>>, vector<94x30xf32>
    %8 = arith.subf %6, %7 : vector<94x30xf32>
    %cst = arith.constant 0.00392156886 : f32
    %9 = vector.broadcast %cst : f32 to vector<94x30xf32>
    %10 = arith.mulf %8, %9 : vector<94x30xf32>
    %11 = arith.addf %5, %10 : vector<94x30xf32>
    %12 = tpu.concatenate %5, %11 in 1 : vector<94x30xf32>, vector<94x30xf32> -> vector<94x60xf32>
    %c0_6 = arith.constant 0 : index
    %c0_7 = arith.constant 0 : index
    %13 = vector.load %arg4[%c0_6, %c0_7] : memref<64x32xf32, #tpu.memory_space<vmem>>, vector<32x32xf32>
    %cst_8 = arith.constant dense<0.000000e+00> : vector<96x32xf32>
    %14 = tpu.matmul %2, %13, %cst_8 {dimension_numbers = #tpu.dot_dimension_numbers<[1], [0], [0], [1], [0, 0, 1, 1], [], []>} : vector<96x32xf32>, vector<32x32xf32>, vector<96x32xf32> -> vector<96x32xf32>
    %15 = vector.extract_strided_slice %14 {offsets = [0, 0], sizes = [94, 30], strides = [1, 1]} : vector<96x32xf32> to vector<94x30xf32>
    %16 = vector.extract_strided_slice %14 {offsets = [2, 2], sizes = [94, 30], strides = [1, 1]} : vector<96x32xf32> to vector<94x30xf32>
    %17 = arith.subf %15, %16 : vector<94x30xf32>
    %c0_9 = arith.constant 0 : index
    %c0_10 = arith.constant 0 : index
    %18 = vector.load %arg3[%c0_9, %c0_10] : memref<192x96xf32, #tpu.memory_space<vmem>>, vector<192x96xf32>
    %cst_11 = arith.constant dense<0.000000e+00> : vector<192x32xf32>
    %19 = tpu.matmul %18, %2, %cst_11 {dimension_numbers = #tpu.dot_dimension_numbers<[1], [0], [0], [1], [0, 0, 1, 1], [], []>} : vector<192x96xf32>, vector<96x32xf32>, vector<192x32xf32> -> vector<192x32xf32>
    %20 = vector.extract_strided_slice %19 {offsets = [0, 0], sizes = [94, 30], strides = [1, 1]} : vector<192x32xf32> to vector<94x30xf32>
    %21 = vector.extract_strided_slice %19 {offsets = [2, 2], sizes = [94, 30], strides = [1, 1]} : vector<192x32xf32> to vector<94x30xf32>
    %22 = arith.subf %20, %21 : vector<94x30xf32>
    %23 = vector.extract_strided_slice %19 {offsets = [96, 0], sizes = [96, 32], strides = [1, 1]} : vector<192x32xf32> to vector<96x32xf32>
    %c32 = arith.constant 32 : index
    %c0_12 = arith.constant 0 : index
    %24 = vector.load %arg4[%c32, %c0_12] : memref<64x32xf32, #tpu.memory_space<vmem>>, vector<32x32xf32>
    %cst_13 = arith.constant dense<0.000000e+00> : vector<96x32xf32>
    %25 = tpu.matmul %23, %24, %cst_13 {dimension_numbers = #tpu.dot_dimension_numbers<[1], [0], [0], [1], [0, 0, 1, 1], [], []>} : vector<96x32xf32>, vector<32x32xf32>, vector<96x32xf32> -> vector<96x32xf32>
    %26 = vector.extract_strided_slice %25 {offsets = [0, 0], sizes = [94, 30], strides = [1, 1]} : vector<96x32xf32> to vector<94x30xf32>
    %27 = vector.extract_strided_slice %25 {offsets = [2, 2], sizes = [94, 30], strides = [1, 1]} : vector<96x32xf32> to vector<94x30xf32>
    %28 = arith.subf %26, %27 : vector<94x30xf32>
    %29 = tpu.concatenate %22, %17, %28 in 1 : vector<94x30xf32>, vector<94x30xf32>, vector<94x30xf32> -> vector<94x90xf32>
    %30 = tpu.concatenate %12, %29 in 1 : vector<94x60xf32>, vector<94x90xf32> -> vector<94x150xf32>
    %c0_14 = arith.constant 0 : index
    %c0_15 = arith.constant 0 : index
    %31 = vector.load %arg5[%c0_14, %c0_15] : memref<94x150xf32, #tpu.memory_space<vmem>>, vector<94x150xf32>
    %32 = arith.mulf %30, %31 : vector<94x150xf32>
    %c0_16 = arith.constant 0 : index
    %c0_17 = arith.constant 0 : index
    %33 = vector.load %arg7[%c0_16, %c0_17] : memref<16x94xf32, #tpu.memory_space<vmem>>, vector<3x94xf32>
    %cst_18 = arith.constant dense<0.000000e+00> : vector<3x150xf32>
    %34 = tpu.matmul %33, %32, %cst_18 {dimension_numbers = #tpu.dot_dimension_numbers<[1], [0], [0], [1], [0, 0, 1, 1], [], []>} : vector<3x94xf32>, vector<94x150xf32>, vector<3x150xf32> -> vector<3x150xf32>
    %c0_19 = arith.constant 0 : index
    %c0_20 = arith.constant 0 : index
    %35 = vector.load %arg6[%c0_19, %c0_20] : memref<150x15xf32, #tpu.memory_space<vmem>>, vector<150x15xf32>
    %cst_21 = arith.constant dense<0.000000e+00> : vector<3x15xf32>
    %36 = tpu.matmul %34, %35, %cst_21 {dimension_numbers = #tpu.dot_dimension_numbers<[1], [0], [0], [1], [0, 0, 1, 1], [], []>} : vector<3x150xf32>, vector<150x15xf32>, vector<3x15xf32> -> vector<3x15xf32>
    %c0_22 = arith.constant 0 : index
    %c0_23 = arith.constant 0 : index
    %37 = memref.load %arg8[%c0_22, %c0_23] : memref<1x1xf32, #tpu.memory_space<smem>>
    %38 = vector.broadcast %37 : f32 to vector<3x15xf32>
    %39 = arith.addf %36, %38 : vector<3x15xf32>
    %c8 = arith.constant 8 : index
    %c0_24 = arith.constant 0 : index
    %40 = vector.load %arg7[%c8, %c0_24] : memref<16x94xf32, #tpu.memory_space<vmem>>, vector<3x15xf32>
    %cst_25 = arith.constant 2.000000e+00 : f32
    %41 = vector.broadcast %cst_25 : f32 to vector<3x15xf32>
    %42 = arith.mulf %41, %40 : vector<3x15xf32>
    %cst_26 = arith.constant 1.000000e+00 : f32
    %43 = vector.broadcast %cst_26 : f32 to vector<3x15xf32>
    %44 = arith.subf %43, %42 : vector<3x15xf32>
    %cst_27 = arith.constant -5.000000e-01 : f32
    %cst_28 = arith.constant 5.000000e-01 : f32
    %45 = vector.broadcast %cst_27 : f32 to vector<3x15xf32>
    %46 = arith.maximumf %45, %39 : vector<3x15xf32>
    %47 = vector.broadcast %cst_28 : f32 to vector<3x15xf32>
    %48 = arith.minimumf %47, %46 : vector<3x15xf32>
    %49 = arith.mulf %44, %48 : vector<3x15xf32>
    %50 = vector.shape_cast %49 : vector<3x15xf32> to vector<1x3x15xf32>
    %cst_29 = arith.constant dense<0.000000e+00> : vector<1xf32>
    %51 = vector.multi_reduction <add>, %50, %cst_29 [1, 2] : vector<1x3x15xf32> to vector<1xf32>
    %52 = vector.shape_cast %51 : vector<1xf32> to vector<1x1x1xf32>
    %53 = vector.extract %52[0, 0, 0] : f32 from vector<1x1x1xf32>
    %cst_30 = arith.constant 0.000000e+00 : f32
    %54 = vector.broadcast %cst_30 : f32 to vector<3x15xf32>
    %55 = arith.cmpf ogt, %39, %54 : vector<3x15xf32>
    %cst_31 = arith.constant 1.000000e+00 : f32
    %56 = vector.broadcast %cst_31 : f32 to vector<3x15xf32>
    %57 = arith.subf %56, %40 : vector<3x15xf32>
    %58 = arith.select %55, %40, %57 : vector<3x15xi1>, vector<3x15xf32>
    %59 = vector.extract_strided_slice %58 {offsets = [0, 0], sizes = [3, 3], strides = [1, 1]} : vector<3x15xf32> to vector<3x3xf32>
    %60 = vector.shape_cast %59 : vector<3x3xf32> to vector<1x3x3xf32>
    %cst_32 = arith.constant dense<0.000000e+00> : vector<1xf32>
    %61 = vector.multi_reduction <add>, %60, %cst_32 [1, 2] : vector<1x3x3xf32> to vector<1xf32>
    %62 = vector.shape_cast %61 : vector<1xf32> to vector<1x1x1xf32>
    %63 = vector.extract %62[0, 0, 0] : f32 from vector<1x1x1xf32>
    %64 = vector.extract_strided_slice %58 {offsets = [0, 3], sizes = [3, 3], strides = [1, 1]} : vector<3x15xf32> to vector<3x3xf32>
    %65 = vector.shape_cast %64 : vector<3x3xf32> to vector<1x3x3xf32>
    %cst_33 = arith.constant dense<0.000000e+00> : vector<1xf32>
    %66 = vector.multi_reduction <add>, %65, %cst_33 [1, 2] : vector<1x3x3xf32> to vector<1xf32>
    %67 = vector.shape_cast %66 : vector<1xf32> to vector<1x1x1xf32>
    %68 = vector.extract %67[0, 0, 0] : f32 from vector<1x1x1xf32>
    %69 = arith.minimumf %63, %68 : f32
    %70 = vector.extract_strided_slice %58 {offsets = [0, 6], sizes = [3, 3], strides = [1, 1]} : vector<3x15xf32> to vector<3x3xf32>
    %71 = vector.shape_cast %70 : vector<3x3xf32> to vector<1x3x3xf32>
    %cst_34 = arith.constant dense<0.000000e+00> : vector<1xf32>
    %72 = vector.multi_reduction <add>, %71, %cst_34 [1, 2] : vector<1x3x3xf32> to vector<1xf32>
    %73 = vector.shape_cast %72 : vector<1xf32> to vector<1x1x1xf32>
    %74 = vector.extract %73[0, 0, 0] : f32 from vector<1x1x1xf32>
    %75 = arith.minimumf %69, %74 : f32
    %76 = vector.extract_strided_slice %58 {offsets = [0, 9], sizes = [3, 3], strides = [1, 1]} : vector<3x15xf32> to vector<3x3xf32>
    %77 = vector.shape_cast %76 : vector<3x3xf32> to vector<1x3x3xf32>
    %cst_35 = arith.constant dense<0.000000e+00> : vector<1xf32>
    %78 = vector.multi_reduction <add>, %77, %cst_35 [1, 2] : vector<1x3x3xf32> to vector<1xf32>
    %79 = vector.shape_cast %78 : vector<1xf32> to vector<1x1x1xf32>
    %80 = vector.extract %79[0, 0, 0] : f32 from vector<1x1x1xf32>
    %81 = arith.minimumf %75, %80 : f32
    %82 = vector.extract_strided_slice %58 {offsets = [0, 12], sizes = [3, 3], strides = [1, 1]} : vector<3x15xf32> to vector<3x3xf32>
    %83 = vector.shape_cast %82 : vector<3x3xf32> to vector<1x3x3xf32>
    %cst_36 = arith.constant dense<0.000000e+00> : vector<1xf32>
    %84 = vector.multi_reduction <add>, %83, %cst_36 [1, 2] : vector<1x3x3xf32> to vector<1xf32>
    %85 = vector.shape_cast %84 : vector<1xf32> to vector<1x1x1xf32>
    %86 = vector.extract %85[0, 0, 0] : f32 from vector<1x1x1xf32>
    %87 = arith.minimumf %81, %86 : f32
    %c0_37 = arith.constant 0 : index
    %c0_38 = arith.constant 0 : index
    %88 = vector.load %arg1[%c0_37, %c0_38] : memref<96x32xf32, #tpu.memory_space<vmem>>, vector<96x32xf32>
    %89 = math.absf %88 : vector<96x32xf32>
    %90 = vector.shape_cast %89 : vector<96x32xf32> to vector<1x96x32xf32>
    %cst_39 = arith.constant dense<0.000000e+00> : vector<1xf32>
    %91 = vector.multi_reduction <add>, %90, %cst_39 [1, 2] : vector<1x96x32xf32> to vector<1xf32>
    %92 = vector.shape_cast %91 : vector<1xf32> to vector<1x1x1xf32>
    %93 = vector.extract %92[0, 0, 0] : f32 from vector<1x1x1xf32>
    %cst_40 = arith.constant 0.0222222228 : f32
    %94 = arith.mulf %53, %cst_40 : f32
    %cst_41 = arith.constant 2.000000e+01 : f32
    %95 = arith.mulf %cst_41, %93 : f32
    %cst_42 = arith.constant 3.25520843E-4 : f32
    %96 = arith.mulf %95, %cst_42 : f32
    %97 = arith.addf %94, %96 : f32
    %c0_43 = arith.constant 0 : index
    %c0_44 = arith.constant 0 : index
    %98 = memref.load %arg9[%c0_43, %c0_44] : memref<1x1xf32, #tpu.memory_space<smem>>
    memref.store %97, %arg9[%c0_43, %c0_44] : memref<1x1xf32, #tpu.memory_space<smem>>
    %c0_45 = arith.constant 0 : index
    %c0_46 = arith.constant 0 : index
    %99 = memref.load %arg10[%c0_45, %c0_46] : memref<1x1xf32, #tpu.memory_space<smem>>
    memref.store %87, %arg10[%c0_45, %c0_46] : memref<1x1xf32, #tpu.memory_space<smem>>
    return
  }
}

</mosaic_0001>

<bundles_post_ra>
// kernel: forward.1
= control target key start
LH: loop header
LB: loop body
LE: loop exit
PB: predicated region body
PF: predicated region fallthrough
CT: control target
= control target key end

     0   :  { %17 = vsyncpa [#allocation4], 0  ;;  %s3317_s0 = inlined_call_operand.hbm [shape: f32[96,32], index: 0, kind: input, shape index: {}]   ;;  %s3318_s1 = inlined_call_operand.hbm [shape: f32[96,32], index: 1, kind: input, shape index: {}]   ;;  %s3319_s2 = inlined_call_operand.hbm [shape: f32[96,32], index: 2, kind: input, shape index: {}]   ;;  %s3320_s3 = inlined_call_operand.hbm [shape: f32[192,96], index: 3, kind: input, shape index: {}]   ;;  %s3321_s4 = inlined_call_operand.hbm [shape: f32[64,32], index: 4, kind: input, shape index: {}]   ;;  %s3322_s5 = inlined_call_operand.hbm [shape: f32[94,150], index: 5, kind: input, shape index: {}]   ;;  %s3323_s6 = inlined_call_operand.hbm [shape: f32[150,15], index: 6, kind: input, shape index: {}]   ;;  %s3324_s7 = inlined_call_operand.vmem [shape: f32[16,94], index: 7, kind: input, shape index: {}]   ;;  %s3325_s8 = inlined_call_operand.<no memory space> [shape: f32[1,1], index: 8, kind: input, shape index: {}]   ;;  %s3326_s9 = inlined_call_operand.hbm [shape: f32[1,1], index: 9, kind: output, shape index: {0}]   ;;  %s3327_s10 = inlined_call_operand.hbm [shape: f32[1,1], index: 10, kind: output, shape index: {1}]  }
   0x1   :  { %18 = vsyncpa [#allocation7], 0 }
   0x2   :  { %19 = vsyncpa [#allocation10], 0 }
   0x3   :  { %20 = vsyncpa [#allocation13], 0 }
   0x4   :  { %21 = vsyncpa [#allocation5], 0 }
   0x5   :  { %22 = vsyncpa [#allocation17], 0  ;;  %s2420_s13 = smov [#allocation6]   ;;  %s2421_s15 = smov [#allocation9]  }
   0x6   :  { %s40_s14 = sshll.u32 %s2420_s13, 4  ;;  %s64_s16 = sshll.u32 %s2421_s15, 4  ;;  %s41_s14 = int_to_ptr.vmem [resolvable:$true] %s40_s14  ;;  %s2498_s16 = int_to_ptr.vmem [resolvable:$true] %s64_s16 }
   0x7   :  { %s2234_s19 = scalar_lea.hbm %s3318_s1, 1536 }
   0x8   :  { %p2235_p0 = scmp.ne.s32.totalorder %s3318_s1, %s2234_s19  ;;  %p2238_p1 = scmp.lt.u32.totalorder %s2234_s19, %s3318_s1 }
   0xa   :  { %p2240_p2 = pnand %p2238_p1, %p2235_p0 }
   0xc   :  { %2243 = shalt.err (!%p2240_p2)
}
   0xd   :  { %s2244_s24 = scalar_lea.vmem %s41_s14, 1536  ;;  %p2249_p4 = scmp.lt.s32.totalorder %s41_s14, %s41_s14 }
   0xe   :  { %p2245_p3 = scmp.ne.s32.totalorder %s41_s14, %s2244_s24  ;;  %p2250_p5 = scmp.lt.s32.totalorder %s2244_s24, %s2244_s24 }
  0x10   :  { %p2251_p6 = por %p2250_p5, %p2249_p4 }
  0x12   :  { %p2252_p7 = pnand %p2251_p6, %p2245_p3 }
  0x14   :  { %2255 = shalt.err (!%p2252_p7)
}
  0x15   :  { %s2422_s25 = smov 128   ;;  %s2423_s26 = smov 8  }
  0x16   :  { %46 = dma.hbm_to_vmem [thread:$0]  %s3318_s1, 1536, %s41_s14, [#allocation7], %s2422_s25, %s2422_s25, %s2423_s26  }
  0x17   :  { %s2256_s11 = scalar_lea.hbm %s3320_s3, 3072 }
  0x18   :  { %p2257_p8 = scmp.ne.s32.totalorder %s3320_s3, %s2256_s11  ;;  %p2260_p9 = scmp.lt.u32.totalorder %s2256_s11, %s3320_s3 }
  0x1a   :  { %p2262_p10 = pnand %p2260_p9, %p2257_p8 }
  0x1c   :  { %2265 = shalt.err (!%p2262_p10)
}
  0x1d   :  { %s2266_s18 = scalar_lea.vmem %s2498_s16, 3072  ;;  %p2271_p12 = scmp.lt.s32.totalorder %s2498_s16, %s2498_s16 }
  0x1e   :  { %p2267_p11 = scmp.ne.s32.totalorder %s2498_s16, %s2266_s18  ;;  %p2272_p13 = scmp.lt.s32.totalorder %s2266_s18, %s2266_s18 }
  0x20   :  { %p2273_p0 = por %p2272_p13, %p2271_p12 }
  0x22   :  { %p2274_p1 = pnand %p2273_p0, %p2267_p11 }
  0x24   :  { %2277 = shalt.err (!%p2274_p1)
}
  0x25   :  { %70 = dma.hbm_to_vmem [thread:$0]  %s3320_s3, 3072, %s2498_s16, [#allocation10], %s2422_s25, %s2422_s25, %s2423_s26  }
  0x26   :  { %s2424_s19 = smov [#allocation12]   ;;  %s2278_s23 = scalar_lea.hbm %s3322_s5, 3072 }
  0x27   :  { %s88_s20 = sshll.u32 %s2424_s19, 4  ;;  %p2279_p2 = scmp.ne.s32.totalorder %s3322_s5, %s2278_s23  ;;  %s89_s20 = int_to_ptr.vmem [resolvable:$true] %s88_s20 }
  0x28   :  { %p2282_p3 = scmp.lt.u32.totalorder %s2278_s23, %s3322_s5 }
  0x2a   :  { %p2284_p4 = pnand %p2282_p3, %p2279_p2 }
  0x2c   :  { %2287 = shalt.err (!%p2284_p4)
}
  0x2d   :  { %s2288_s30 = scalar_lea.vmem %s89_s20, 3072  ;;  %p2293_p6 = scmp.lt.s32.totalorder %s89_s20, %s89_s20 }
  0x2e   :  { %p2289_p5 = scmp.ne.s32.totalorder %s89_s20, %s2288_s30  ;;  %p2294_p7 = scmp.lt.s32.totalorder %s2288_s30, %s2288_s30 }
  0x30   :  { %p2295_p8 = por %p2294_p7, %p2293_p6 }
  0x32   :  { %p2296_p9 = pnand %p2295_p8, %p2289_p5 }
  0x34   :  { %2299 = shalt.err (!%p2296_p9)
}
  0x35   :  { %s2425_s3 = smov 256   ;;  %s2426_s16 = smov 16  }
  0x36   :  { %94 = dma.hbm_to_vmem [thread:$0]  %s3322_s5, 3072, %s89_s20, [#allocation13], %s2425_s3, %s2425_s3, %s2426_s16  }
  0x37   :  { %s2427_s13 = smov [#allocation3]   ;;  %s2428_s17 = smov [#allocation8]  }
  0x38   :  { %s28_s15 = sshll.u32 %s2427_s13, 4  ;;  %s52_s18 = sshll.u32 %s2428_s17, 4  ;;  %s29_s15 = int_to_ptr.vmem [resolvable:$true] %s28_s15  ;;  %s53_s18 = int_to_ptr.vmem [resolvable:$true] %s52_s18 }
  0x39   :  { %s2300_s19 = scalar_lea.hbm %s3317_s0, 1536 }
  0x3a   :  { %p2301_p10 = scmp.ne.s32.totalorder %s3317_s0, %s2300_s19  ;;  %p2304_p11 = scmp.lt.u32.totalorder %s2300_s19, %s3317_s0 }
  0x3c   :  { %p2306_p12 = pnand %p2304_p11, %p2301_p10 }
  0x3e   :  { %2309 = shalt.err (!%p2306_p12)
}
  0x3f   :  { %s2310_s5 = scalar_lea.vmem %s29_s15, 1536  ;;  %p2315_p0 = scmp.lt.s32.totalorder %s29_s15, %s29_s15 }
  0x40   :  { %p2311_p13 = scmp.ne.s32.totalorder %s29_s15, %s2310_s5  ;;  %p2316_p1 = scmp.lt.s32.totalorder %s2310_s5, %s2310_s5 }
  0x42   :  { %p2317_p2 = por %p2316_p1, %p2315_p0 }
  0x44   :  { %p2318_p3 = pnand %p2317_p2, %p2311_p13 }
  0x46   :  { %2321 = shalt.err (!%p2318_p3)
}
  0x47   :  { %34 = dma.hbm_to_vmem [thread:$0]  %s3317_s0, 1536, %s29_s15, [#allocation4], %s2422_s25, %s2422_s25, %s2423_s26  }
  0x48   :  { %s2322_s30 = scalar_lea.hbm %s3319_s2, 1536 }
  0x49   :  { %p2323_p4 = scmp.ne.s32.totalorder %s3319_s2, %s2322_s30  ;;  %p2326_p5 = scmp.lt.u32.totalorder %s2322_s30, %s3319_s2 }
  0x4b   :  { %p2328_p6 = pnand %p2326_p5, %p2323_p4 }
  0x4d   :  { %2331 = shalt.err (!%p2328_p6)
}
  0x4e   :  { %s2332_s13 = scalar_lea.vmem %s53_s18, 1536  ;;  %p2337_p8 = scmp.lt.s32.totalorder %s53_s18, %s53_s18 }
  0x4f   :  { %p2333_p7 = scmp.ne.s32.totalorder %s53_s18, %s2332_s13  ;;  %p2338_p9 = scmp.lt.s32.totalorder %s2332_s13, %s2332_s13 }
  0x51   :  { %p2339_p10 = por %p2338_p9, %p2337_p8 }
  0x53   :  { %p2340_p11 = pnand %p2339_p10, %p2333_p7 }
  0x55   :  { %2343 = shalt.err (!%p2340_p11)
}
  0x56   :  { %58 = dma.hbm_to_vmem [thread:$0]  %s3319_s2, 1536, %s53_s18, [#allocation7], %s2422_s25, %s2422_s25, %s2423_s26  }
  0x57   :  { %s2429_s17 = smov [#allocation11]   ;;  %s2430_s14 = smov [#allocation14]  }
  0x58   :  { %s76_s1 = sshll.u32 %s2429_s17, 4  ;;  %s100_s19 = sshll.u32 %s2430_s14, 4  ;;  %s77_s1 = int_to_ptr.vmem [resolvable:$true] %s76_s1  ;;  %s101_s19 = int_to_ptr.vmem [resolvable:$true] %s100_s19 }
  0x59   :  { %s2344_s23 = scalar_lea.hbm %s3321_s4, 1024 }
  0x5a   :  { %p2345_p12 = scmp.ne.s32.totalorder %s3321_s4, %s2344_s23  ;;  %p2348_p13 = scmp.lt.u32.totalorder %s2344_s23, %s3321_s4 }
  0x5c   :  { %p2350_p0 = pnand %p2348_p13, %p2345_p12 }
  0x5e   :  { %2353 = shalt.err (!%p2350_p0)
}
  0x5f   :  { %s2354_s2 = scalar_lea.vmem %s77_s1, 1024  ;;  %p2359_p2 = scmp.lt.s32.totalorder %s77_s1, %s77_s1 }
  0x60   :  { %p2355_p1 = scmp.ne.s32.totalorder %s77_s1, %s2354_s2  ;;  %p2360_p3 = scmp.lt.s32.totalorder %s2354_s2, %s2354_s2 }
  0x62   :  { %p2361_p4 = por %p2360_p3, %p2359_p2 }
  0x64   :  { %p2362_p5 = pnand %p2361_p4, %p2355_p1 }
  0x66   :  { %2365 = shalt.err (!%p2362_p5)
}
  0x67   :  { %82 = dma.hbm_to_vmem [thread:$0]  %s3321_s4, 1024, %s77_s1, [#allocation10], %s2422_s25, %s2422_s25, %s2423_s26  }
  0x68   :  { %s2366_s3 = scalar_lea.hbm %s3323_s6, 2432 }
  0x69   :  { %p2367_p6 = scmp.ne.s32.totalorder %s3323_s6, %s2366_s3  ;;  %p2370_p7 = scmp.lt.u32.totalorder %s2366_s3, %s3323_s6 }
  0x6b   :  { %p2372_p8 = pnand %p2370_p7, %p2367_p6 }
  0x6d   :  { %2375 = shalt.err (!%p2372_p8)
}
  0x6e   :  { %s2376_s0 = scalar_lea.vmem %s101_s19, 2432  ;;  %p2381_p10 = scmp.lt.s32.totalorder %s101_s19, %s101_s19 }
  0x6f   :  { %p2377_p9 = scmp.ne.s32.totalorder %s101_s19, %s2376_s0  ;;  %p2382_p11 = scmp.lt.s32.totalorder %s2376_s0, %s2376_s0 }
  0x71   :  { %p2383_p12 = por %p2382_p11, %p2381_p10 }
  0x73   :  { %p2384_p13 = pnand %p2383_p12, %p2377_p9 }
  0x75   :  { %2387 = shalt.err (!%p2384_p13)
}
  0x76   :  { %106 = dma.hbm_to_vmem [thread:$0]  %s3323_s6, 2432, %s101_s19, [#allocation13], %s2422_s25, %s2422_s25, %s2423_s26  }
  0x77   :  { %2408 = dma.done.wait [#allocation4], 1536  }
  0x78   :  { %2409 = vsyncadd [#allocation4], 4294965760 }
  0x79   :  { %2410 = dma.done.wait [#allocation7], 3072  }
  0x7a   :  { %2411 = vsyncadd [#allocation7], 4294964224 }
  0x7b   :  { %2412 = dma.done.wait [#allocation10], 4096  }
  0x7c   :  { %2413 = vsyncadd [#allocation10], 4294963200 }
  0x7d   :  { %2414 = dma.done.wait [#allocation13], 5504  }
  0x7e   :  { %2415 = vsyncadd [#allocation13], 4294961792  ;;  %v421_v0 = vld [vmem:[#allocation11] sm:$0xff]  ;;  %v422_v1 = vld [vmem:[#allocation11 + $0x8] sm:$0xff]  ;;  %vm425_vm0 = vcmask 261120   ;;  %vm682_vm1 = vcmask 785408  }
  0x7f   :  { %v132_v2 = vld [vmem:[#allocation3] sm:$0xff]  ;;  %v2083_v3 = vpack.c.bf16 %v422_v1, %v421_v0  ;;  %v133_v4 = vld [vmem:[#allocation3 + $0x8] sm:$0xff]  ;;  %v423_v11 = vld [vmem:[#allocation11 + $0x10] sm:$0xff]  ;;  %s2431_s6 = smov 126   ;;  %vm180_vm2 = vcmask 1045504   ;;  %s2432_s25 = smov 30  }
  0x80   :  { %v144_v5 = vld [vmem:[#allocation6] sm:$0xff]  ;;  %v145_v6 = vld [vmem:[#allocation6 + $0x8] sm:$0xff]  ;;  %v424_v12 = vld [vmem:[#allocation11 + $0x18] sm:$0xff]  ;;  %vm408_vm3 = vcmask 244736   ;;  %s2433_s26 = smov 60   ;;  %vm1379_vm4 = vcmask 490496  }
  0x81   :  { %v2607_v7 = vadd.f32 %v144_v5, %v132_v2  ;;  %v2609_v8 = vadd.f32 %v145_v6, %v133_v4  ;;  %v1768_v9 = vand.u32 2147483647, %v144_v5  ;;  %v1769_v10 = vand.u32 2147483647, %v145_v6  ;;  %2084 = vmatprep.subr.bf16.mxu0 %v2083_v3  ;;  %v134_v14 = vld [vmem:[#allocation3 + $0x10] sm:$0xff]  ;;  %v135_v15 = vld [vmem:[#allocation3 + $0x18] sm:$0xff] }
  0x82   :  { %v2087_v13 = vpack.c.bf16 %v424_v12, %v423_v11  ;;  %v146_v16 = vld [vmem:[#allocation6 + $0x10] sm:$0xff]  ;;  %2086 = vmatpush3.bf16.msra.mxu0 %v2083_v3  ;;  %v147_v20 = vld [vmem:[#allocation6 + $0x18] sm:$0xff]  ;;  %v136_v22 = vld [vmem:[#allocation3 + $0x20] sm:$0xff]  ;;  %vm2436_vm5 = vmmov 1   ;;  %vm1501_vm7 = vcmask 769024   ;;  %vm1603_vm8 = vcmask 179200  }
  0x83   :  { %v2091_v17 = vpack.c.bf16 %v2609_v8, %v2607_v7  ;;  %v1780_v18 = vsel %vm425_vm0, %v1768_v9, 0.0  ;;  %v1781_v19 = vsel %vm425_vm0, %v1769_v10, 0.0  ;;  %v2615_v21 = vadd.f32 %v146_v16, %v134_v14  ;;  %1979 = vmatprep.mubr.msk.f32.mxu0 %vm425_vm0, %v2607_v7  ;;  %v137_v23 = vld [vmem:[#allocation3 + $0x28] sm:$0xff]  ;;  %v148_v27 = vld [vmem:[#allocation6 + $0x20] sm:$0xff]  ;;  %v138_v31 = vld [vmem:[#allocation3 + $0x30] sm:$0xff]  ;;  %s2437_s23 = smov 122  }
  0x84   :  { %v1782_v24 = vadd.f32 %v1781_v19, %v1780_v18  ;;  %2088 = vmatprep.subr.bf16.mxu0 %v2087_v13  ;;  %v2619_v25 = vadd.f32 %v147_v20, %v135_v15  ;;  %v1770_v26 = vand.u32 2147483647, %v146_v16  ;;  %v149_v28 = vld [vmem:[#allocation6 + $0x28] sm:$0xff]  ;;  %v2621_v29 = vadd.f32 %v148_v27, %v136_v22  ;;  %v139_v32 = vld [vmem:[#allocation3 + $0x38] sm:$0xff]  ;;  %v150_v35 = vld [vmem:[#allocation6 + $0x30] sm:$0xff]  ;;  %s2438_s24 = smov 125  }
  0x85   :  { %2176 = vmatprep.subr.bf16.mxu1 %v2091_v17  ;;  %v2623_v30 = vadd.f32 %v149_v28, %v137_v23  ;;  %v151_v36 = vld [vmem:[#allocation6 + $0x38] sm:$0xff]  ;;  %v2632_v39 = vadd.f32 %v150_v35, %v138_v31  ;;  %v140_v41 = vld [vmem:[#allocation3 + $0x40] sm:$0xff]  ;;  %v141_v42 = vld [vmem:[#allocation3 + $0x48] sm:$0xff]  ;;  %v181_v60 = vrot.slane %v2607_v7, 2  ;;  %v182_v61 = vrot.slane %v2609_v8, 2  ;;  %s2439_s5 = smov 116  }
  0x86   :  { %2182 = vmatpush3.bf16.msra.mxu1 %v2091_v17  ;;  %v2095_v33 = vpack.c.bf16 %v2619_v25, %v2615_v21  ;;  %v1783_v34 = vsel %vm425_vm0, %v1770_v26, 0.0  ;;  %2090 = vmatpush3.bf16.msra.mxu0 %v2087_v13  ;;  %v2634_v40 = vadd.f32 %v151_v36, %v139_v32  ;;  %v152_v43 = vld [vmem:[#allocation6 + $0x40] sm:$0xff]  ;;  %v153_v44 = vld [vmem:[#allocation6 + $0x48] sm:$0xff]  ;;  %v142_v49 = vld [vmem:[#allocation3 + $0x50] sm:$0xff]  ;;  %v184_v1 = vrot.slane %v2615_v21, 2  ;;  %s2440_s20 = smov 119  }
  0x87   :  { %3339 = vst [vmem:[#allocation24_spill] sm:$0xff] %v2623_v30  ;;  %v2628_v37 = vadd.f32 %v1783_v34, %v1782_v24  ;;  %v2099_v38 = vpack.c.bf16 %v2623_v30, %v2621_v29  ;;  %2092 = vmatprep.subr.bf16.mxu0 %v2091_v17  ;;  %v662_v45 = vld [vmem:[#allocation9 + $0x20] sm:$0xff]  ;;  %v2640_v47 = vadd.f32 %v152_v43, %v140_v41  ;;  %v143_v50 = vld [vmem:[#allocation3 + $0x58] sm:$0xff]  ;;  %v154_v51 = vld [vmem:[#allocation6 + $0x50] sm:$0xff]  ;;  %v186_v2 = vrot.slane %v2619_v25, 2  ;;  %s2388_s15 = scalar_lea.hbm %s3327_s10, 16 }
  0x88   :  { %3341 = vst [vmem:[#allocation26_spill] sm:$0xff] %v2634_v40  ;;  %2177 = vmatprep.subr.bf16.mxu1 %v2095_v33  ;;  %v2103_v46 = vpack.c.bf16 %v2634_v40, %v2632_v39  ;;  %v2642_v48 = vadd.f32 %v153_v44, %v141_v42  ;;  %v155_v52 = vld [vmem:[#allocation6 + $0x58] sm:$0xff]  ;;  %2027 = vmatprep.mubr.msk.f32.mxu1 %vm682_vm1, %v662_v45  ;;  %v264_v56 = vld [vmem:[#allocation8 + $0x2] sm:$0xff]  ;;  %v265_v57 = vld [vmem:[#allocation8 + $0xa] sm:$0xff]  ;;  %v188_v6 = vrot.slane %v2621_v29, 2  ;;  %v192_v43 = vrot.slane %v2632_v39, 2  ;;  %p2389_p0 = scmp.ne.s32.totalorder %s3327_s10, %s2388_s15  ;;  %p2392_p1 = scmp.lt.u32.totalorder %s2388_s15, %s3327_s10 }
  0x89   :  { %3340 = vst [vmem:[#allocation25_spill] sm:$0xff] %v2628_v37  ;;  %1980 = vmatmul.mubr.msk.f32.vlgmr.msra.gmra.mrb[0].mxu0 %vm425_vm0, %v2609_v8  ;;  %v2651_v54 = vadd.f32 %v154_v51, %v142_v49  ;;  %v2653_v55 = vadd.f32 %v155_v52, %v143_v50  ;;  %288 = vrot.lane.b32.xlu0 %v264_v56, %s2431_s6  ;;  %v266_v59 = vld [vmem:[#allocation8 + $0x12] sm:$0xff]  ;;  %v267_v62 = vld [vmem:[#allocation8 + $0x1a] sm:$0xff]  ;;  %v663_v63 = vld [vmem:[#allocation9 + $0x28] sm:$0xff]  ;;  %v194_v44 = vrot.slane %v2634_v40, 2  ;;  %v3329_v50 = vrot.slane %v2640_v47, 2 }
  0x8a   :  { %2183 = vmatpush3.bf16.msra.mxu1 %v2095_v33  ;;  %2094 = vmatpush3.bf16.msra.mxu0 %v2091_v17  ;;  %v2107_v53 = vpack.c.bf16 %v2642_v48, %v2640_v47  ;;  %v183_v0 = vsel %vm180_vm2, %v181_v60, %v182_v61  ;;  %v664_v3 = vld [vmem:[#allocation9 + $0x30] sm:$0xff]  ;;  %v658_v4 = vld [vmem:[#allocation9] sm:$0xff]  ;;  %v185_v5 = vsel %vm180_vm2, %v182_v61, %v184_v1  ;;  %v665_v9 = vld [vmem:[#allocation9 + $0x38] sm:$0xff]  ;;  %v190_v17 = vrot.slane %v2623_v30, 2  ;;  %p2394_p2 = pnand %p2392_p1, %p2389_p0 }
  0x8b   :  { %2178 = vmatprep.subr.bf16.mxu1 %v2099_v38  ;;  %1982 = vmatprep.mubr.msk.f32.mxu0 %vm425_vm0, %v2615_v21  ;;  %v2111_v58 = vpack.c.bf16 %v2653_v55, %v2651_v54  ;;  %v187_v10 = vsel %vm180_vm2, %v184_v1, %v186_v2  ;;  %v659_v11 = vld [vmem:[#allocation9 + $0x8] sm:$0xff]  ;;  %v666_v12 = vld [vmem:[#allocation9 + $0x40] sm:$0xff]  ;;  %v660_v13 = vld [vmem:[#allocation9 + $0x10] sm:$0xff]  ;;  %v189_v14 = vsel %vm180_vm2, %v186_v2, %v188_v6  ;;  %vm1686_vm10 = vcmask 116736  }
  0x8c   :  { %2096 = vmatprep.subr.bf16.mxu0 %v2095_v33  ;;  %290 = vrot.lane.b32.xlu1 %v265_v57, %s2431_s6  ;;  %v667_v15 = vld [vmem:[#allocation9 + $0x48] sm:$0xff]  ;;  %v661_v18 = vld [vmem:[#allocation9 + $0x18] sm:$0xff]  ;;  %v668_v19 = vld [vmem:[#allocation9 + $0x50] sm:$0xff]  ;;  %v191_v23 = vsel %vm180_vm2, %v188_v6, %v190_v17  ;;  %v193_v45 = vsel %vm180_vm2, %v190_v17, %v192_v43  ;;  %v197_v51 = vsel %vm180_vm2, %v194_v44, %v3329_v50  ;;  %vm1700_vm11 = vcmask 18432  }
  0x8d   :  { %1983 = vmatmul.mubr.msk.f32.gmra.mrb[2].mxu0 %vm425_vm0, %v2619_v25  ;;  %292 = vrot.lane.b32.xlu0 %v266_v59, %s2431_s6  ;;  %v268_v16 = vld [vmem:[#allocation8 + $0x22] sm:$0xff]  ;;  %v269_v20 = vld [vmem:[#allocation8 + $0x2a] sm:$0xff]  ;;  %v669_v22 = vld [vmem:[#allocation9 + $0x58] sm:$0xff] }
  0x8e   :  { %2184 = vmatpush3.bf16.msra.mxu1 %v2099_v38  ;;  %2098 = vmatpush3.bf16.msra.mxu0 %v2095_v33  ;;  %v670_v24 = vld [vmem:[#allocation9 + $0x60] sm:$0xff]  ;;  %v671_v26 = vld [vmem:[#allocation9 + $0x68] sm:$0xff]  ;;  %v270_v27 = vld [vmem:[#allocation8 + $0x32] sm:$0xff] }
  0x8f   :  { %2179 = vmatprep.subr.bf16.mxu1 %v2103_v46  ;;  %1985 = vmatprep.mubr.msk.f32.mxu0 %vm425_vm0, %v2621_v29  ;;  %v672_v28 = vld [vmem:[#allocation9 + $0x70] sm:$0xff]  ;;  %v673_v31 = vld [vmem:[#allocation9 + $0x78] sm:$0xff]  ;;  %v674_v32 = vld [vmem:[#allocation9 + $0x80] sm:$0xff] }
  0x90   :  { %2100 = vmatprep.subr.bf16.mxu0 %v2099_v38  ;;  %294 = vrot.lane.b32.xlu1 %v267_v62, %s2431_s6  ;;  %v675_v33 = vld [vmem:[#allocation9 + $0x88] sm:$0xff]  ;;  %v676_v34 = vld [vmem:[#allocation9 + $0x90] sm:$0xff]  ;;  %v677_v35 = vld [vmem:[#allocation9 + $0x98] sm:$0xff] }
  0x91   :  { %1986 = vmatmul.mubr.msk.f32.gmra.mrb[4].mxu0 %vm425_vm0, %v2623_v30  ;;  %204 = vrot.lane.b32.xlu0 %v183_v0, %s2431_s6  ;;  %v678_v36 = vld [vmem:[#allocation9 + $0xa0] sm:$0xff]  ;;  %v680_v41 = vld [vmem:[#allocation9 + $0xb0] sm:$0xff]  ;;  %v681_v42 = vld [vmem:[#allocation9 + $0xb8] sm:$0xff] }
  0x92   :  { %2185 = vmatpush3.bf16.msra.mxu1 %v2103_v46  ;;  %2102 = vmatpush3.bf16.msra.mxu0 %v2099_v38  ;;  %v679_v38 = vld [vmem:[#allocation9 + $0xa8] sm:$0xff]  ;;  %v271_v49 = vld [vmem:[#allocation8 + $0x3a] sm:$0xff]  ;;  %v1025_v57 = vld [vmem:[#allocation11 + $0x30] sm:$0xff] }
  0x93   :  { %2180 = vmatprep.subr.bf16.mxu1 %v2107_v53  ;;  %1988 = vmatprep.mubr.msk.f32.mxu0 %vm425_vm0, %v2632_v39  ;;  %v1023_v52 = vld [vmem:[#allocation11 + $0x20] sm:$0xff]  ;;  %vm2144_vm6 = vmpackc.low %vm180_vm2, %vm2436_vm5 }
  0x94   :  { %2104 = vmatprep.subr.bf16.mxu0 %v2103_v46  ;;  %206 = vrot.lane.b32.xlu1 %v185_v5, %s2431_s6 }
  0x95   :  { %1989 = vmatmul.mubr.msk.f32.gmra.mrb[6].mxu0 %vm425_vm0, %v2634_v40  ;;  %208 = vrot.lane.b32.xlu0 %v187_v10, %s2431_s6 }
  0x96   :  { %2186 = vmatpush3.bf16.msra.mxu1 %v2107_v53  ;;  %2106 = vmatpush3.bf16.msra.mxu0 %v2103_v46  ;;  %v195_v46 = vsel %vm180_vm2, %v192_v43, %v194_v44 }
  0x97   :  { %2181 = vmatprep.subr.bf16.mxu1 %v2111_v58  ;;  %1991 = vmatprep.mubr.msk.f32.mxu0 %vm425_vm0, %v2640_v47 }
  0x98   :  { %2108 = vmatprep.subr.bf16.mxu0 %v2107_v53  ;;  %210 = vrot.lane.b32.xlu1 %v189_v14, %s2431_s6 }
  0x99   :  { %1992 = vmatmul.mubr.msk.f32.gmra.mrb[8].mxu0 %vm425_vm0, %v2642_v48  ;;  %296 = vrot.lane.b32.xlu0 %v268_v16, %s2431_s6 }
  0x9a   :  { %2187 = vmatpush3.bf16.msra.mxu1 %v2111_v58  ;;  %2110 = vmatpush3.bf16.msra.mxu0 %v2107_v53  ;;  %v1024_v53 = vld [vmem:[#allocation11 + $0x28] sm:$0xff] }
  0x9b   :  { %1994 = vmatprep.mubr.msk.f32.mxu0 %vm425_vm0, %v2651_v54  ;;  %2112 = vmatprep.subr.bf16.mxu0 %v2111_v58  ;;  %v2115_v56 = vpack.c.bf16 %v1024_v53, %v1023_v52 }
  0x9c   :  { %298 = vrot.lane.b32.xlu1 %v269_v20, %s2431_s6 }
  0x9d   :  { %2028 = vmatmul.mubr.msk.f32.vlgmr.msra.gmra.mrb[0].mxu1 %vm682_vm1, %v663_v63  ;;  %1995 = vmatmul.mubr.msk.f32.gmra.mrb[10].mxu0 %vm425_vm0, %v2653_v55 }
  0x9e   :  { %2030 = vmatprep.mubr.msk.f32.mxu1 %vm682_vm1, %v664_v3  ;;  %2114 = vmatpush3.bf16.msra.mxu0 %v2111_v58  ;;  %v1026_v58 = vld [vmem:[#allocation11 + $0x38] sm:$0xff] }
  0x9f   :  { %2021 = vmatprep.mubr.msk.f32.mxu0 %vm682_vm1, %v658_v4  ;;  %212 = vrot.lane.b32.xlu0 %v191_v23, %s2431_s6  ;;  %v2119_v59 = vpack.c.bf16 %v1026_v58, %v1025_v57 }
  0xa0   :  { %214 = vrot.lane.b32.xlu1 %v193_v45, %s2431_s6  ;;  %2116 = vmatprep.subr.bf16.mxu0 %v2115_v56 }
  0xa1   :  { %2031 = vmatmul.mubr.msk.f32.gmra.mrb[2].mxu1 %vm682_vm1, %v665_v9  ;;  %2022 = vmatmul.mubr.msk.f32.vlgmr.msra.gmra.mrb[12].mxu0 %vm682_vm1, %v659_v11 }
  0xa2   :  { %2033 = vmatprep.mubr.msk.f32.mxu1 %vm682_vm1, %v666_v12  ;;  %2024 = vmatprep.mubr.msk.f32.mxu0 %vm682_vm1, %v660_v13 }
  0xa3   :  { %300 = vrot.lane.b32.xlu0 %v270_v27, %s2431_s6  ;;  %2118 = vmatpush3.bf16.msra.mxu0 %v2115_v56 }
  0xa4   :  { %302 = vrot.lane.b32.xlu1 %v271_v49, %s2431_s6  ;;  %2120 = vmatprep.subr.bf16.mxu0 %v2119_v59 }
  0xa5   :  { %2034 = vmatmul.mubr.msk.f32.gmra.mrb[4].mxu1 %vm682_vm1, %v667_v15  ;;  %2025 = vmatmul.mubr.msk.f32.gmra.mrb[14].mxu0 %vm682_vm1, %v661_v18 }
  0xa6   :  { %2036 = vmatprep.mubr.msk.f32.mxu1 %vm682_vm1, %v668_v19 }
  0xa7   :  { %216 = vrot.lane.b32.xlu0 %v195_v46, %s2431_s6  ;;  %2122 = vmatpush3.bf16.msra.mxu0 %v2119_v59 }
  0xa8   :  { %218 = vrot.lane.b32.xlu1 %v197_v51, %s2431_s6 }
  0xa9   :  { %2037 = vmatmul.mubr.msk.f32.gmra.mrb[6].mxu1 %vm682_vm1, %v669_v22 }
  0xaa   :  { %2039 = vmatprep.mubr.msk.f32.mxu1 %vm682_vm1, %v670_v24 }
  0xad   :  { %2040 = vmatmul.mubr.msk.f32.gmra.mrb[8].mxu1 %vm682_vm1, %v671_v26 }
  0xae   :  { %2042 = vmatprep.mubr.msk.f32.mxu1 %vm682_vm1, %v672_v28 }
  0xb1   :  { %2043 = vmatmul.mubr.msk.f32.gmra.mrb[10].mxu1 %vm682_vm1, %v673_v31 }
  0xb2   :  { %2045 = vmatprep.mubr.msk.f32.mxu1 %vm682_vm1, %v674_v32 }
  0xb5   :  { %2046 = vmatmul.mubr.msk.f32.gmra.mrb[12].mxu1 %vm682_vm1, %v675_v33 }
  0xb6   :  { %2048 = vmatprep.mubr.msk.f32.mxu1 %vm682_vm1, %v676_v34 }
  0xb9   :  { %2049 = vmatmul.mubr.msk.f32.gmra.mrb[14].mxu1 %vm682_vm1, %v677_v35 }
  0xba   :  { %2051 = vmatprep.mubr.msk.f32.mxu1 %vm682_vm1, %v678_v36 }
  0xbd   :  { %2052 = vmatmul.mubr.msk.f32.gmra.mrb[16].mxu1 %vm682_vm1, %v679_v38 }
  0xbe   :  { %2054 = vmatprep.mubr.msk.f32.mxu1 %vm682_vm1, %v680_v41 }
  0xc1   :  { %2055 = vmatmul.mubr.msk.f32.gmra.mrb[18].mxu1 %vm682_vm1, %v681_v42 }
 0x15c   :  { %v2731_v60 = vpop.f32.mrb[0].mxu0 }
 0x15d   :  { %v588_v61 = vrot.slane %v2731_v60, 2  ;;  %v2734_v62 = vpop.f32.mrb[1].mxu0 }
 0x15e   :  { %v587_v63 = vrot.slane %v2734_v62, 2 }
 0x160   :  { %v2737_v0 = vpop.f32.mrb[2].mxu0  ;;  %v589_v1 = vsel %vm180_vm2, %v587_v63, %v588_v61 }
 0x161   :  { %v592_v2 = vrot.slane %v2737_v0, 2  ;;  %v2741_v3 = vpop.f32.mrb[3].mxu0  ;;  %610 = vrot.lane.b32.xlu0 %v589_v1, %s2431_s6 }
 0x162   :  { %v590_v4 = vrot.slane %v2741_v3, 2 }
 0x164   :  { %v2745_v5 = vpop.f32.mrb[4].mxu0  ;;  %v591_v6 = vsel %vm180_vm2, %v588_v61, %v590_v4  ;;  %v593_v9 = vsel %vm180_vm2, %v590_v4, %v592_v2 }
 0x165   :  { %v596_v10 = vrot.slane %v2745_v5, 2  ;;  %v2750_v11 = vpop.f32.mrb[5].mxu0  ;;  %612 = vrot.lane.b32.xlu0 %v591_v6, %s2431_s6 }
 0x166   :  { %v594_v12 = vrot.slane %v2750_v11, 2 }
 0x168   :  { %v2754_v13 = vpop.f32.mrb[6].mxu0  ;;  %v595_v14 = vsel %vm180_vm2, %v592_v2, %v594_v12  ;;  %v597_v15 = vsel %vm180_vm2, %v594_v12, %v596_v10 }
 0x169   :  { %v600_v16 = vrot.slane %v2754_v13, 2  ;;  %616 = vrot.lane.b32.xlu1 %v595_v14, %s2431_s6  ;;  %v2760_v17 = vpop.f32.mrb[7].mxu0  ;;  %614 = vrot.lane.b32.xlu0 %v593_v9, %s2431_s6 }
 0x16a   :  { %v598_v18 = vrot.slane %v2760_v17, 2 }
 0x16c   :  { %v2764_v19 = vpop.f32.mrb[8].mxu0  ;;  %v599_v20 = vsel %vm180_vm2, %v596_v10, %v598_v18  ;;  %v601_v22 = vsel %vm180_vm2, %v598_v18, %v600_v16 }
 0x16d   :  { %v604_v23 = vrot.slane %v2764_v19, 2  ;;  %620 = vrot.lane.b32.xlu1 %v599_v20, %s2431_s6  ;;  %v2770_v24 = vpop.f32.mrb[9].mxu0  ;;  %618 = vrot.lane.b32.xlu0 %v597_v15, %s2431_s6 }
 0x16e   :  { %v602_v26 = vrot.slane %v2770_v24, 2 }
 0x170   :  { %v2774_v27 = vpop.f32.mrb[0].mxu1  ;;  %v603_v32 = vsel %vm180_vm2, %v600_v16, %v602_v26  ;;  %v2780_v33 = vpop.f32.mrb[10].mxu0  ;;  %v605_v34 = vsel %vm180_vm2, %v602_v26, %v604_v23 }
 0x171   :  { %3342 = vst [vmem:[#allocation27_spill] sm:$0xff] %v2774_v27  ;;  %v961_v28 = vrot.slane %v2774_v27, 2  ;;  %v2777_v31 = vpop.f32.mrb[1].mxu1  ;;  %624 = vrot.lane.b32.xlu1 %v603_v32, %s2431_s6  ;;  %622 = vrot.lane.b32.xlu0 %v601_v22, %s2431_s6  ;;  %v608_v36 = vrot.slane %v2780_v33, 2  ;;  %v2787_v38 = vpop.f32.mrb[11].mxu0 }
 0x172   :  { %3343 = vst [vmem:[#allocation28_spill] sm:$0xff] %v2777_v31  ;;  %v959_v35 = vrot.slane %v2777_v31, 2  ;;  %v606_v41 = vrot.slane %v2787_v38, 2 }
 0x174   :  { %v2790_v42 = vpop.f32.mrb[2].mxu1  ;;  %v962_v43 = vsel %vm180_vm2, %v959_v35, %v961_v28  ;;  %v2796_v46 = vpop.f32.mrb[12].mxu0  ;;  %v607_v49 = vsel %vm180_vm2, %v604_v23, %v606_v41  ;;  %v609_v51 = vsel %vm180_vm2, %v606_v41, %v608_v36 }
 0x175   :  { %v965_v44 = vrot.slane %v2790_v42, 2  ;;  %v2794_v45 = vpop.f32.mrb[3].mxu1  ;;  %632 = vrot.lane.b32.xlu1 %v608_v36, %s2431_s6  ;;  %626 = vrot.lane.b32.xlu0 %v605_v34, %s2431_s6  ;;  %v953_v53 = vrot.slane %v2796_v46, 2  ;;  %v2804_v56 = vpop.f32.mrb[13].mxu0 }
 0x176   :  { %v963_v52 = vrot.slane %v2794_v45, 2  ;;  %v952_v57 = vrot.slane %v2804_v56, 2 }
 0x178   :  { %v2807_v58 = vpop.f32.mrb[4].mxu1  ;;  %v964_v59 = vsel %vm180_vm2, %v961_v28, %v963_v52  ;;  %v966_v61 = vsel %vm180_vm2, %v963_v52, %v965_v44  ;;  %v2814_v2 = vpop.f32.mrb[14].mxu0  ;;  %v954_v4 = vsel %vm180_vm2, %v952_v57, %v953_v53 }
 0x179   :  { %3344 = vst [vmem:[#allocation29_spill] sm:$0xff] %v2807_v58  ;;  %v969_v63 = vrot.slane %v2807_v58, 2  ;;  %v2812_v1 = vpop.f32.mrb[5].mxu1  ;;  %v957_v9 = vrot.slane %v2814_v2, 2  ;;  %628 = vrot.lane.b32.xlu1 %v607_v49, %s2431_s6  ;;  %983 = vrot.lane.b32.xlu0 %v962_v43, %s2431_s6  ;;  %v2821_v10 = vpop.f32.mrb[15].mxu0 }
 0x17a   :  { %3345 = vst [vmem:[#allocation30_spill] sm:$0xff] %v2812_v1  ;;  %v967_v6 = vrot.slane %v2812_v1, 2  ;;  %v955_v12 = vrot.slane %v2821_v10, 2 }
 0x17b   :  { %v960_v15 = vsel %vm180_vm2, %v957_v9, %v959_v35 }
 0x17c   :  { %v2824_v14 = vpop.f32.mrb[6].mxu1  ;;  %v2828_v16 = vsel %vm180_vm2, %v965_v44, %v967_v6  ;;  %v2831_v18 = vsel %vm180_vm2, %v967_v6, %v969_v63  ;;  %v956_v23 = vsel %vm180_vm2, %v953_v53, %v955_v12  ;;  %v958_v26 = vsel %vm180_vm2, %v955_v12, %v957_v9  ;;  %v2870_v6 = vpop.permute.xlu1 %290 }
 0x17d   :  { %v3328_v20 = vrot.slane %v2824_v14, 2  ;;  %v2834_v22 = vpop.f32.mrb[7].mxu1  ;;  %985 = vrot.lane.b32.xlu1 %v964_v59, %s2431_s6  ;;  %630 = vrot.lane.b32.xlu0 %v609_v51, %s2431_s6 }
 0x17e   :  { %3346 = vst [vmem:[#allocation31_spill] sm:$0xff] %v2834_v22  ;;  %v971_v28 = vrot.slane %v2834_v22, 2 }
 0x180   :  { %v2041_v32 = vpop.f32.mrb[8].mxu1  ;;  %v2842_v34 = vsel %vm180_vm2, %v969_v63, %v971_v28  ;;  %v2847_v35 = vsel %vm180_vm2, %v971_v28, %v3328_v20  ;;  %v2866_v63 = vpop.permute.xlu0 %288 }
 0x181   :  { %v881_v36 = vpop.f32.mrb[9].mxu1  ;;  %981 = vrot.lane.b32.xlu1 %v960_v15, %s2431_s6  ;;  %987 = vrot.lane.b32.xlu0 %v966_v61, %s2431_s6  ;;  %v2874_v12 = vpop.permute.xlu1 %294 }
 0x182   :  { %2065 = vmatprep.mubr.msk.f32.mxu0 %vm425_vm0, %v881_v36 }
 0x183   :  { %2066 = vmatmul.mubr.msk.f32.vlgmr.msra.gmra.mrb[16].mxu0 %vm425_vm0, %v2041_v32 }
 0x184   :  { %v2044_v41 = vpop.f32.mrb[10].mxu1 }
 0x185   :  { %v891_v43 = vpop.f32.mrb[11].mxu1  ;;  %977 = vrot.lane.b32.xlu1 %v956_v23, %s2431_s6  ;;  %975 = vrot.lane.b32.xlu0 %v954_v4, %s2431_s6  ;;  %v2868_v4 = vpop.permute.xlu0 %292 }
 0x186   :  { %2068 = vmatprep.mubr.msk.f32.mxu0 %vm425_vm0, %v891_v43  ;;  %v2878_v23 = vpop.permute.xlu1 %206 }
 0x187   :  { %2069 = vmatmul.mubr.msk.f32.gmra.mrb[18].mxu0 %vm425_vm0, %v2044_v41 }
 0x188   :  { %v2047_v44 = vpop.f32.mrb[12].mxu1 }
 0x189   :  { %v901_v49 = vpop.f32.mrb[13].mxu1  ;;  %979 = vrot.lane.b32.xlu0 %v958_v26, %s2431_s6  ;;  %v2872_v9 = vpop.permute.xlu0 %204 }
 0x18a   :  { %2071 = vmatprep.mubr.msk.f32.mxu0 %vm425_vm0, %v901_v49  ;;  %v2882_v28 = vpop.permute.xlu1 %210 }
 0x18b   :  { %2072 = vmatmul.mubr.msk.f32.gmra.mrb[20].mxu0 %vm425_vm0, %v2047_v44 }
 0x18c   :  { %v2050_v51 = vpop.f32.mrb[14].mxu1 }
 0x18d   :  { %v911_v52 = vpop.f32.mrb[15].mxu1  ;;  %v2876_v15 = vpop.permute.xlu0 %208 }
 0x18e   :  { %2074 = vmatprep.mubr.msk.f32.mxu0 %vm425_vm0, %v911_v52  ;;  %v2886_v36 = vpop.permute.xlu1 %298 }
 0x18f   :  { %2075 = vmatmul.mubr.msk.f32.gmra.mrb[22].mxu0 %vm425_vm0, %v2050_v51 }
 0x190   :  { %v2053_v53 = vpop.f32.mrb[16].mxu1 }
 0x191   :  { %v921_v57 = vpop.f32.mrb[17].mxu1  ;;  %v2880_v26 = vpop.permute.xlu0 %296 }
 0x192   :  { %2077 = vmatprep.mubr.msk.f32.mxu0 %vm425_vm0, %v921_v57  ;;  %v2890_v43 = vpop.permute.xlu1 %214 }
 0x193   :  { %2078 = vmatmul.mubr.msk.f32.gmra.mrb[24].mxu0 %vm425_vm0, %v2053_v53  ;;  %3347 = vst [vmem:[#allocation32_spill] sm:$0xff] %v2890_v43 }
 0x194   :  { %v2056_v59 = vpop.f32.mrb[18].mxu1 }
 0x195   :  { %v931_v61 = vpop.f32.mrb[19].mxu1  ;;  %v2884_v32 = vpop.permute.xlu0 %212 }
 0x196   :  { %2080 = vmatprep.mubr.msk.f32.mxu0 %vm425_vm0, %v931_v61  ;;  %v2894_v49 = vpop.permute.xlu1 %302 }
 0x197   :  { %2081 = vmatmul.mubr.msk.f32.gmra.mrb[26].mxu0 %vm425_vm0, %v2056_v59  ;;  %3348 = vst [vmem:[#allocation33_spill] sm:$0xff] %v2894_v49 }
 0x199   :  { %v2888_v41 = vpop.permute.xlu0 %300 }
 0x19a   :  { %v2897_v53 = vpop.permute.xlu1 %218 }
 0x19b   :  { %3349 = vst [vmem:[#allocation34_spill] sm:$0xff] %v2897_v53 }
 0x19d   :  { %v2892_v44 = vpop.permute.xlu0 %216 }
 0x1d3   :  { %v611_v51 = vpop.permute.xlu0 %610 }
 0x1d4   :  { %v646_v52 = vsub.f32 %v2734_v62, %v611_v51 }
 0x1d6   :  { %1283 = vrot.lane.b32.xlu0 %v646_v52, %s2432_s25 }
 0x1d7   :  { %v613_v57 = vpop.permute.xlu0 %612 }
 0x1d8   :  { %v647_v59 = vsub.f32 %v2731_v60, %v613_v57 }
 0x1da   :  { %1285 = vrot.lane.b32.xlu1 %v647_v59, %s2432_s25 }
 0x1db   :  { %v617_v61 = vpop.permute.xlu1 %616  ;;  %v615_v20 = vpop.permute.xlu0 %614 }
 0x1dc   :  { %v649_v50 = vsub.f32 %v2737_v0, %v617_v61  ;;  %v648_v37 = vsub.f32 %v2741_v3, %v615_v20 }
 0x1de   :  { %1289 = vrot.lane.b32.xlu1 %v649_v50, %s2432_s25  ;;  %1287 = vrot.lane.b32.xlu0 %v648_v37, %s2432_s25 }
 0x1df   :  { %v621_v62 = vpop.permute.xlu1 %620  ;;  %v619_v51 = vpop.permute.xlu0 %618 }
 0x1e0   :  { %v651_v22 = vsub.f32 %v2745_v5, %v621_v62  ;;  %v650_v52 = vsub.f32 %v2750_v11, %v619_v51 }
 0x1e2   :  { %1293 = vrot.lane.b32.xlu1 %v651_v22, %s2432_s25  ;;  %1291 = vrot.lane.b32.xlu0 %v650_v52, %s2432_s25 }
 0x1e3   :  { %v2910_v60 = vpop.permute.xlu1 %624  ;;  %v2912_v57 = vpop.permute.xlu0 %622 }
 0x1e7   :  { %v2914_v0 = vpop.permute.xlu1 %632  ;;  %v2916_v3 = vpop.permute.xlu0 %626 }
 0x1eb   :  { %v2918_v50 = vpop.permute.xlu1 %628  ;;  %v2920_v37 = vpop.permute.xlu0 %983 }
 0x1ec   :  { %3350 = vst [vmem:[#allocation35_spill] sm:$0xff] %v2920_v37 }
 0x1ef   :  { %v2924_v11 = vpop.permute.xlu1 %985  ;;  %v2926_v20 = vpop.permute.xlu0 %630 }
 0x1f0   :  { %3351 = vst [vmem:[#allocation36_spill] sm:$0xff] %v2924_v11 }
 0x1f3   :  { %v982_v59 = vpop.permute.xlu1 %981  ;;  %v2931_v62 = vpop.permute.xlu0 %987 }
 0x1f4   :  { %v1014_v61 = vsub.f32 %v2814_v2, %v982_v59 }
 0x1f7   :  { %v976_v52 = vpop.permute.xlu0 %975  ;;  %v978_v5 = vpop.permute.xlu1 %977 }
 0x1f8   :  { %v1011_v58 = vsub.f32 %v2804_v56, %v976_v52  ;;  %v1012_v22 = vsub.f32 %v2796_v46, %v978_v5 }
 0x1fb   :  { %v980_v40 = vpop.permute.xlu0 %979 }
 0x1fc   :  { %v1013_v59 = vsub.f32 %v2821_v10, %v980_v40 }
 0x248   :  { %v1284_v37 = vpop.permute.xlu0 %1283 }
 0x249   :  { %v2937_v31 = vsel %vm408_vm3, %v1011_v58, %v1284_v37 }
 0x24a   :  { %3352 = vst [vmem:[#allocation37_spill] sm:$0xff] %v2937_v31 }
 0x24c   :  { %v1286_v11 = vpop.permute.xlu1 %1285 }
 0x24d   :  { %v2941_v2 = vsel %vm408_vm3, %v1012_v22, %v1286_v11 }
 0x24e   :  { %3353 = vst [vmem:[#allocation38_spill] sm:$0xff] %v2941_v2 }
 0x250   :  { %v1290_v27 = vpop.permute.xlu1 %1289  ;;  %v1288_v51 = vpop.permute.xlu0 %1287 }
 0x251   :  { %v2945_v53 = vsel %vm408_vm3, %v1014_v61, %v1290_v27  ;;  %v2948_v56 = vsel %vm408_vm3, %v1013_v59, %v1288_v51 }
 0x252   :  { %3354 = vst [vmem:[#allocation39_spill] sm:$0xff] %v2945_v53  ;;  %3355 = vst [vmem:[#allocation40_spill] sm:$0xff] %v2948_v56 }
 0x256   :  { %v2950_v52 = vpop.f32.mrb[16].mxu0 }
 0x257   :  { %v1201_v58 = vrot.slane %v2950_v52, 2  ;;  %v2953_v37 = vpop.f32.mrb[17].mxu0 }
 0x258   :  { %v1200_v46 = vrot.slane %v2953_v37, 2 }
 0x25a   :  { %v2956_v5 = vpop.f32.mrb[18].mxu0  ;;  %v1202_v40 = vsel %vm180_vm2, %v1200_v46, %v1201_v58 }
 0x25b   :  { %v1205_v10 = vrot.slane %v2956_v5, 2  ;;  %v2960_v11 = vpop.f32.mrb[19].mxu0  ;;  %1223 = vrot.lane.b32.xlu1 %v1202_v40, %s2431_s6 }
 0x25c   :  { %v1203_v27 = vrot.slane %v2960_v11, 2 }
 0x25e   :  { %v2964_v22 = vpop.f32.mrb[20].mxu0  ;;  %v1204_v61 = vsel %vm180_vm2, %v1201_v58, %v1203_v27  ;;  %v1206_v51 = vsel %vm180_vm2, %v1203_v27, %v1205_v10 }
 0x25f   :  { %v1209_v59 = vrot.slane %v2964_v22, 2  ;;  %v2969_v53 = vpop.f32.mrb[21].mxu0  ;;  %1225 = vrot.lane.b32.xlu1 %v1204_v61, %s2431_s6  ;;  %1227 = vrot.lane.b32.xlu0 %v1206_v51, %s2431_s6 }
 0x260   :  { %v1207_v46 = vrot.slane %v2969_v53, 2 }
 0x262   :  { %v2974_v2 = vpop.f32.mrb[22].mxu0  ;;  %v1208_v40 = vsel %vm180_vm2, %v1205_v10, %v1207_v46  ;;  %v1210_v56 = vsel %vm180_vm2, %v1207_v46, %v1209_v59 }
 0x263   :  { %v1213_v58 = vrot.slane %v2974_v2, 2  ;;  %v2979_v31 = vpop.f32.mrb[23].mxu0  ;;  %1229 = vrot.lane.b32.xlu1 %v1208_v40, %s2431_s6  ;;  %1231 = vrot.lane.b32.xlu0 %v1210_v56, %s2431_s6 }
 0x264   :  { %v1211_v27 = vrot.slane %v2979_v31, 2 }
 0x266   :  { %v2984_v61 = vpop.f32.mrb[24].mxu0  ;;  %v1212_v51 = vsel %vm180_vm2, %v1209_v59, %v1211_v27  ;;  %v1214_v1 = vsel %vm180_vm2, %v1211_v27, %v1213_v58 }
 0x267   :  { %v1217_v10 = vrot.slane %v2984_v61, 2  ;;  %v2989_v49 = vpop.f32.mrb[25].mxu0  ;;  %1233 = vrot.lane.b32.xlu1 %v1212_v51, %s2431_s6  ;;  %1235 = vrot.lane.b32.xlu0 %v1214_v1, %s2431_s6 }
 0x268   :  { %v1215_v46 = vrot.slane %v2989_v49, 2 }
 0x26a   :  { %v2994_v40 = vpop.f32.mrb[26].mxu0  ;;  %v1216_v56 = vsel %vm180_vm2, %v1213_v58, %v1215_v46  ;;  %v1218_v30 = vsel %vm180_vm2, %v1215_v46, %v1217_v10  ;;  %v272_v58 = vld [vmem:[#allocation8 + $0x42] sm:$0xff]  ;;  %v198_v46 = vrot.slane %v2642_v48, 2 }
 0x26b   :  { %v1221_v59 = vrot.slane %v2994_v40, 2  ;;  %v2999_v43 = vpop.f32.mrb[27].mxu0  ;;  %1237 = vrot.lane.b32.xlu1 %v1216_v56, %s2431_s6  ;;  %1239 = vrot.lane.b32.xlu0 %v1218_v30, %s2431_s6  ;;  %v652_v30 = vsub.f32 %v2760_v17, %v2912_v57  ;;  %v3356_v56 = vrot.slane %v2640_v47, 2  ;;  %v202_v57 = vrot.slane %v2653_v55, 2 }
 0x26c   :  { %v1219_v27 = vrot.slane %v2999_v43, 2 }
 0x26e   :  { %v1222_v1 = vsel %vm180_vm2, %v1219_v27, %v1221_v59  ;;  %v1220_v51 = vsel %vm180_vm2, %v1217_v10, %v1219_v27  ;;  %v273_v10 = vld [vmem:[#allocation8 + $0x4a] sm:$0xff]  ;;  %v200_v27 = vrot.slane %v2651_v54, 2 }
 0x26f   :  { %1245 = vrot.lane.b32.xlu1 %v1221_v59, %s2431_s6  ;;  %1243 = vrot.lane.b32.xlu0 %v1222_v1, %s2431_s6  ;;  %v199_v59 = vsel %vm180_vm2, %v3356_v56, %v198_v46  ;;  %v653_v1 = vsub.f32 %v2754_v13, %v2910_v60  ;;  %v275_v13 = vld [vmem:[#allocation8 + $0x5a] sm:$0x3f]  ;;  %v655_v60 = vsub.f32 %v2764_v19, %v2918_v50  ;;  %v3054_v19 = vpop.permute.xlu1 %1293  ;;  %v3056_v50 = vpop.permute.xlu0 %1291 }
 0x270   :  { %v201_v17 = vsel %vm180_vm2, %v198_v46, %v200_v27 }
 0x273   :  { %1241 = vrot.lane.b32.xlu1 %v1220_v51, %s2431_s6  ;;  %304 = vrot.lane.b32.xlu0 %v272_v58, %s2431_s6  ;;  %v654_v51 = vsub.f32 %v2770_v24, %v2916_v3  ;;  %v656_v24 = vsub.f32 %v2787_v38, %v2926_v20  ;;  %v657_v3 = vsub.f32 %v2780_v33, %v2914_v0 }
 0x277   :  { %989 = vrot.lane.b32.xlu1 %v2828_v16, %s2431_s6  ;;  %1295 = vrot.lane.b32.xlu0 %v652_v30, %s2432_s25  ;;  %v274_v16 = vld [vmem:[#allocation8 + $0x52] sm:$0xff] }
 0x27b   :  { %306 = vrot.lane.b32.xlu1 %v273_v10, %s2431_s6  ;;  %220 = vrot.lane.b32.xlu0 %v199_v59, %s2431_s6 }
 0x27f   :  { %1297 = vrot.lane.b32.xlu1 %v653_v1, %s2432_s25  ;;  %991 = vrot.lane.b32.xlu0 %v2831_v18, %s2431_s6  ;;  %v203_v18 = vsel %vm180_vm2, %v200_v27, %v202_v57  ;;  %v252_v27 = vld [vmem:[#allocation8] sm:$0xff] }
 0x283   :  { %222 = vrot.lane.b32.xlu1 %v201_v17, %s2431_s6  ;;  %308 = vrot.lane.b32.xlu0 %v274_v16, %s2431_s6 }
 0x287   :  { %993 = vrot.lane.b32.xlu1 %v2842_v34, %s2431_s6  ;;  %1299 = vrot.lane.b32.xlu0 %v654_v51, %s2432_s25  ;;  %v3357_v34 = vrot.slane %v2824_v14, 2 }
 0x28b   :  { %310 = vrot.lane.b32.xlu1 %v275_v13, %s2431_s6  ;;  %224 = vrot.lane.b32.xlu0 %v203_v18, %s2431_s6 }
 0x28f   :  { %1301 = vrot.lane.b32.xlu1 %v655_v60, %s2432_s25  ;;  %995 = vrot.lane.b32.xlu0 %v2847_v35, %s2431_s6  ;;  %v3080_v60 = vsub.f32 %v2607_v7, %v2872_v9 }
 0x293   :  { %226 = vrot.lane.b32.xlu1 %v202_v57, %s2431_s6  ;;  %1303 = vrot.lane.b32.xlu0 %v656_v24, %s2432_s25 }
 0x297   :  { %997 = vrot.lane.b32.xlu1 %v3357_v34, %s2431_s6  ;;  %v255_v34 = vld [vmem:[#allocation8 + $0x18] sm:$0xff] }
 0x29b   :  { %1305 = vrot.lane.b32.xlu1 %v657_v3, %s2432_s25 }
 0x2cd   :  { %v1224_v35 = vpop.permute.xlu1 %1223 }
 0x2ce   :  { %v1259_v38 = vsub.f32 %v2953_v37, %v1224_v35 }
 0x2d0   :  { %1331 = vrot.lane.b32.xlu0 %v1259_v38, %s2433_s26 }
 0x2d1   :  { %v1226_v20 = vpop.permute.xlu1 %1225  ;;  %v1228_v58 = vpop.permute.xlu0 %1227 }
 0x2d2   :  { %v1260_v46 = vsub.f32 %v2950_v52, %v1226_v20  ;;  %v1261_v30 = vsub.f32 %v2960_v11, %v1228_v58  ;;  %v258_v20 = vld [vmem:[#allocation8 + $0x30] sm:$0xff] }
 0x2d4   :  { %1333 = vrot.lane.b32.xlu1 %v1260_v46, %s2433_s26  ;;  %1335 = vrot.lane.b32.xlu0 %v1261_v30, %s2433_s26 }
 0x2d5   :  { %v1230_v33 = vpop.permute.xlu1 %1229  ;;  %v1232_v0 = vpop.permute.xlu0 %1231 }
 0x2d6   :  { %v1262_v10 = vsub.f32 %v2956_v5, %v1230_v33  ;;  %v1263_v56 = vsub.f32 %v2969_v53, %v1232_v0  ;;  %v324_v5 = vsub.f32 %v252_v27, %v2866_v63  ;;  %v254_v53 = vld [vmem:[#allocation8 + $0x10] sm:$0xff]  ;;  %v256_v63 = vld [vmem:[#allocation8 + $0x20] sm:$0xff]  ;;  %v257_v33 = vld [vmem:[#allocation8 + $0x28] sm:$0xff] }
 0x2d7   :  { %v328_v3 = vsub.f32 %v256_v63, %v2880_v26  ;;  %v3102_v26 = vsub.f32 %v2621_v29, %v2884_v32  ;;  %v3117_v32 = vsub.f32 %v2619_v25, %v2882_v28  ;;  %v262_v63 = vld [vmem:[#allocation8 + $0x50] sm:$0xff] }
 0x2d8   :  { %1337 = vrot.lane.b32.xlu1 %v1262_v10, %s2433_s26  ;;  %1339 = vrot.lane.b32.xlu0 %v1263_v56, %s2433_s26  ;;  %v336_v18 = vmul.f32 0.003921569, %v324_v5  ;;  %v3358_v56 = vsub.f32 %v2794_v45, %v2931_v62  ;;  %v261_v5 = vld [vmem:[#allocation8 + $0x48] sm:$0xff] }
 0x2d9   :  { %v1234_v37 = vpop.permute.xlu1 %1233  ;;  %v1236_v59 = vpop.permute.xlu0 %1235 }
 0x2da   :  { %v1264_v52 = vsub.f32 %v2964_v22, %v1234_v37  ;;  %v1265_v11 = vsub.f32 %v2979_v31, %v1236_v59  ;;  %v326_v31 = vsub.f32 %v254_v53, %v2868_v4  ;;  %v253_v22 = vld [vmem:[#allocation8 + $0x8] sm:$0xff]  ;;  %v3087_v4 = vsub.f32 %v2615_v21, %v2876_v15 }
 0x2db   :  { %v348_v7 = vadd.f32 %v336_v18, %v3080_v60  ;;  %v3098_v21 = vsub.f32 %v2609_v8, %v2878_v23  ;;  %v340_v15 = vmul.f32 0.003921569, %v328_v3  ;;  %v3124_v59 = vsub.f32 %v2632_v39, %v2892_v44  ;;  %v3364_v3 = vld [vmem:[#allocation26_spill] sm:$0xff] }
 0x2dc   :  { %1341 = vrot.lane.b32.xlu1 %v1264_v52, %s2433_s26  ;;  %1343 = vrot.lane.b32.xlu0 %v1265_v11, %s2433_s26  ;;  %v259_v52 = vld [vmem:[#allocation8 + $0x38] sm:$0xff] }
 0x2dd   :  { %v1238_v1 = vpop.permute.xlu1 %1237  ;;  %v1240_v17 = vpop.permute.xlu0 %1239  ;;  %v352_v45 = vadd.f32 %v340_v15, %v3102_v26 }
 0x2de   :  { %v1266_v16 = vsub.f32 %v2974_v2, %v1238_v1  ;;  %v1267_v57 = vsub.f32 %v2989_v49, %v1240_v17  ;;  %v325_v2 = vsub.f32 %v253_v22, %v2870_v6  ;;  %v338_v49 = vmul.f32 0.003921569, %v326_v31  ;;  %v3360_v1 = vld [vmem:[#allocation24_spill] sm:$0xff]  ;;  %v3362_v31 = vld [vmem:[#allocation30_spill] sm:$0xff] }
 0x2df   :  { %v327_v6 = vsub.f32 %v255_v34, %v2874_v12  ;;  %v330_v12 = vsub.f32 %v258_v20, %v2888_v41  ;;  %v329_v41 = vsub.f32 %v257_v33, %v2886_v36  ;;  %v3359_v36 = vld [vmem:[#allocation32_spill] sm:$0xff]  ;;  %v3363_v34 = vld [vmem:[#allocation34_spill] sm:$0xff] }
 0x2e0   :  { %1345 = vrot.lane.b32.xlu1 %v1266_v16, %s2433_s26  ;;  %1347 = vrot.lane.b32.xlu0 %v1267_v57, %s2433_s26  ;;  %v350_v58 = vadd.f32 %v338_v49, %v3087_v4  ;;  %v3134_v17 = vsub.f32 %v3360_v1, %v3359_v36  ;;  %v3361_v16 = vld [vmem:[#allocation33_spill] sm:$0xff] }
 0x2e1   :  { %v1246_v51 = vpop.permute.xlu1 %1245  ;;  %v1244_v13 = vpop.permute.xlu0 %1243  ;;  %v339_v29 = vmul.f32 0.003921569, %v327_v6  ;;  %v342_v62 = vmul.f32 0.003921569, %v330_v12  ;;  %v341_v28 = vmul.f32 0.003921569, %v329_v41  ;;  %v331_v57 = vsub.f32 %v259_v52, %v3361_v16 }
 0x2e2   :  { %v1269_v24 = vsub.f32 %v2999_v43, %v1244_v13  ;;  %v337_v43 = vmul.f32 0.003921569, %v325_v2  ;;  %v1270_v0 = vsub.f32 %v2994_v40, %v1246_v51  ;;  %v3370_v16 = vld [vmem:[#allocation35_spill] sm:$0xff] }
 0x2e3   :  { %v351_v25 = vadd.f32 %v339_v29, %v3117_v32  ;;  %v354_v44 = vadd.f32 %v342_v62, %v3124_v59  ;;  %v353_v2 = vadd.f32 %v341_v28, %v3134_v17  ;;  %v343_v49 = vmul.f32 0.003921569, %v331_v57 }
 0x2e4   :  { %1351 = vrot.lane.b32.xlu0 %v1269_v24, %s2433_s26  ;;  %v349_v37 = vadd.f32 %v337_v43, %v3098_v21 }
 0x2e5   :  { %v1242_v35 = vpop.permute.xlu1 %1241  ;;  %v305_v38 = vpop.permute.xlu0 %304 }
 0x2e6   :  { %v1268_v9 = vsub.f32 %v2984_v61, %v1242_v35  ;;  %v260_v61 = vld [vmem:[#allocation8 + $0x40] sm:$0xff]  ;;  %v3148_v35 = vsub.f32 %v3364_v3, %v3363_v34 }
 0x2e7   :  { %v332_v23 = vsub.f32 %v260_v61, %v305_v38 }
 0x2e8   :  { %1349 = vrot.lane.b32.xlu1 %v1268_v9, %s2433_s26  ;;  %372 = vrot.lane.b32.xlu0 %v348_v7, %s2432_s25  ;;  %v355_v6 = vadd.f32 %v343_v49, %v3148_v35 }
 0x2e9   :  { %v990_v46 = vpop.permute.xlu1 %989  ;;  %v1296_v30 = vpop.permute.xlu0 %1295  ;;  %v344_v11 = vmul.f32 0.003921569, %v332_v23 }
 0x2ea   :  { %v1018_v10 = vsub.f32 %v2790_v42, %v990_v46  ;;  %v3111_v8 = vsel %vm408_vm3, %v3358_v56, %v1296_v30 }
 0x2ec   :  { %1353 = vrot.lane.b32.xlu1 %v1270_v0, %s2433_s26  ;;  %376 = vrot.lane.b32.xlu0 %v350_v58, %s2432_s25  ;;  %v3365_v58 = vld [vmem:[#allocation29_spill] sm:$0xff] }
 0x2ed   :  { %v307_v40 = vpop.permute.xlu1 %306  ;;  %v221_v42 = vpop.permute.xlu0 %220 }
 0x2ee   :  { %v3127_v27 = vsub.f32 %v2640_v47, %v221_v42  ;;  %v333_v51 = vsub.f32 %v261_v5, %v307_v40  ;;  %v3367_v5 = vld [vmem:[#allocation40_spill] sm:$0xff] }
 0x2f0   :  { %374 = vrot.lane.b32.xlu1 %v349_v37, %s2432_s25  ;;  %380 = vrot.lane.b32.xlu0 %v352_v45, %s2432_s25  ;;  %v356_v13 = vadd.f32 %v344_v11, %v3127_v27  ;;  %v345_v38 = vmul.f32 0.003921569, %v333_v51 }
 0x2f1   :  { %v1298_v53 = vpop.permute.xlu1 %1297  ;;  %v992_v39 = vpop.permute.xlu0 %991 }
 0x2f2   :  { %v3139_v47 = vsel %vm408_vm3, %v1018_v10, %v1298_v53  ;;  %v1019_v22 = vsub.f32 %v3362_v31, %v992_v39  ;;  %v3368_v53 = vld [vmem:[#allocation38_spill] sm:$0xff] }
 0x2f4   :  { %378 = vrot.lane.b32.xlu1 %v351_v25, %s2432_s25  ;;  %384 = vrot.lane.b32.xlu0 %v354_v44, %s2432_s25  ;;  %v3366_v25 = vld [vmem:[#allocation37_spill] sm:$0xff]  ;;  %v3369_v44 = vld [vmem:[#allocation28_spill] sm:$0xff] }
 0x2f5   :  { %v223_v18 = vpop.permute.xlu1 %222  ;;  %v309_v24 = vpop.permute.xlu0 %308  ;;  %v3371_v57 = vsub.f32 %v3369_v44, %v3370_v16  ;;  %v1594_v44 = vld [vmem:[#allocation14 + $0x60] sm:$0xff]  ;;  %v1595_v16 = vld [vmem:[#allocation14 + $0x68] sm:$0xff] }
 0x2f6   :  { %v3151_v7 = vsub.f32 %v2642_v48, %v223_v18  ;;  %v334_v9 = vsub.f32 %v262_v63, %v309_v24  ;;  %v263_v48 = vld [vmem:[#allocation8 + $0x58] sm:$0x3f]  ;;  %v3373_v24 = vld [vmem:[#allocation27_spill] sm:$0xff] }
 0x2f7   :  { %v1371_v31 = vsel %vm408_vm3, %v3371_v57, %v3056_v50  ;;  %v2168_v57 = vpack.c.bf16 %v1595_v16, %v1594_v44  ;;  %v1460_v16 = vld [vmem:[#allocation12 + $0x40] sm:$0xff] }
 0x2f8   :  { %382 = vrot.lane.b32.xlu1 %v353_v2, %s2432_s25  ;;  %388 = vrot.lane.b32.xlu0 %v356_v13, %s2432_s25  ;;  %v357_v46 = vadd.f32 %v345_v38, %v3151_v7  ;;  %v346_v30 = vmul.f32 0.003921569, %v334_v9  ;;  %v3372_v13 = vld [vmem:[#allocation39_spill] sm:$0xff]  ;;  %v3374_v2 = vld [vmem:[#allocation36_spill] sm:$0xff] }
 0x2f9   :  { %v994_v20 = vpop.permute.xlu1 %993  ;;  %v1300_v43 = vpop.permute.xlu0 %1299  ;;  %v3375_v49 = vsub.f32 %v3373_v24, %v3374_v2 }
 0x2fa   :  { %v1020_v15 = vsub.f32 %v3365_v58, %v994_v20  ;;  %v1375_v61 = vsel %vm408_vm3, %v1019_v22, %v1300_v43 }
 0x2fb   :  { %v1372_v34 = vsel %vm408_vm3, %v3375_v49, %v3054_v19 }
 0x2fc   :  { %386 = vrot.lane.b32.xlu1 %v355_v6, %s2432_s25 }
 0x2fd   :  { %v311_v33 = vpop.permute.xlu1 %310  ;;  %v225_v12 = vpop.permute.xlu0 %224 }
 0x2fe   :  { %v3161_v0 = vsub.f32 %v2651_v54, %v225_v12  ;;  %v335_v10 = vsub.f32 %v263_v48, %v311_v33  ;;  %v2434_v48 = vmov 0.0   ;;  %v1582_v12 = vld [vmem:[#allocation14] sm:$0xff] }
 0x2ff   :  { %1575 = vmatprep.mubr.f32.mxu0 %v2434_v48 }
 0x300   :  { %v358_v56 = vadd.f32 %v346_v30, %v3161_v0  ;;  %390 = vrot.lane.b32.xlu1 %v357_v46, %s2432_s25  ;;  %v347_v41 = vmul.f32 0.003921569, %v335_v10  ;;  %v1584_v10 = vld [vmem:[#allocation14 + $0x10] sm:$0xff] }
 0x301   :  { %v1302_v23 = vpop.permute.xlu1 %1301  ;;  %v996_v54 = vpop.permute.xlu0 %995 }
 0x302   :  { %v1376_v29 = vsel %vm408_vm3, %v1020_v15, %v1302_v23  ;;  %392 = vrot.lane.b32.xlu0 %v358_v56, %s2432_s25  ;;  %v3376_v15 = vld [vmem:[#allocation31_spill] sm:$0xff]  ;;  %v2435_v23 = vmov 0.0|0.0  }
 0x303   :  { %v1021_v19 = vsub.f32 %v3376_v15, %v996_v54  ;;  %2149 = vmatprep.subr.bf16.mxu1 %v2435_v23 }
 0x305   :  { %v227_v40 = vpop.permute.xlu1 %226  ;;  %v1304_v62 = vpop.permute.xlu0 %1303 }
 0x306   :  { %v3168_v42 = vsub.f32 %v2653_v55, %v227_v40  ;;  %v1377_v46 = vsel %vm408_vm3, %v1021_v19, %v1304_v62  ;;  %v1585_v40 = vld [vmem:[#allocation14 + $0x18] sm:$0xff] }
 0x307   :  { %v2153_v62 = vpack.c.bf16 %v1585_v40, %v1584_v10 }
 0x308   :  { %v359_v37 = vadd.f32 %v347_v41, %v3168_v42 }
 0x309   :  { %v998_v45 = vpop.permute.xlu1 %997 }
 0x30a   :  { %394 = vrot.lane.b32.xlu1 %v359_v37, %s2432_s25  ;;  %v1022_v56 = vsub.f32 %v2824_v14, %v998_v45  ;;  %v1588_v45 = vld [vmem:[#allocation14 + $0x30] sm:$0xff] }
 0x30d   :  { %v1306_v52 = vpop.permute.xlu1 %1305 }
 0x30e   :  { %v1378_v37 = vsel %vm408_vm3, %v1022_v56, %v1306_v52  ;;  %v1591_v52 = vld [vmem:[#allocation14 + $0x48] sm:$0xff] }
 0x342   :  { %v1332_v11 = vpop.permute.xlu0 %1331 }
 0x343   :  { %v1380_v28 = vsel %vm1379_vm4, %v3366_v25, %v1332_v11  ;;  %v1587_v25 = vld [vmem:[#allocation14 + $0x28] sm:$0xff] }
 0x344   :  { %1404 = vrot.lane.b32.xlu0 %v1380_v28, %s2433_s26  ;;  %v1589_v28 = vld [vmem:[#allocation14 + $0x38] sm:$0xff] }
 0x346   :  { %v1334_v36 = vpop.permute.xlu1 %1333  ;;  %v1336_v1 = vpop.permute.xlu0 %1335 }
 0x347   :  { %v1382_v55 = vsel %vm1379_vm4, %v3367_v5, %v1336_v1  ;;  %v1381_v39 = vsel %vm1379_vm4, %v3368_v53, %v1334_v36  ;;  %v2159_v36 = vpack.c.bf16 %v1589_v28, %v1588_v45  ;;  %v1590_v1 = vld [vmem:[#allocation14 + $0x40] sm:$0xff]  ;;  %v1593_v53 = vld [vmem:[#allocation14 + $0x58] sm:$0xff] }
 0x348   :  { %1406 = vrot.lane.b32.xlu1 %v1381_v39, %s2433_s26  ;;  %1408 = vrot.lane.b32.xlu0 %v1382_v55, %s2433_s26  ;;  %v2162_v5 = vpack.c.bf16 %v1591_v52, %v1590_v1  ;;  %v1592_v55 = vld [vmem:[#allocation14 + $0x50] sm:$0xff] }
 0x349   :  { %v2165_v39 = vpack.c.bf16 %v1593_v53, %v1592_v55  ;;  %v1461_v53 = vld [vmem:[#allocation12 + $0x48] sm:$0xff] }
 0x34a   :  { %v1338_v22 = vpop.permute.xlu1 %1337  ;;  %v1340_v51 = vpop.permute.xlu0 %1339 }
 0x34b   :  { %v1383_v18 = vsel %vm1379_vm4, %v3372_v13, %v1338_v22  ;;  %v1384_v63 = vsel %vm1379_vm4, %v1371_v31, %v1340_v51  ;;  %v1596_v31 = vld [vmem:[#allocation14 + $0x70] sm:$0xff]  ;;  %v1597_v22 = vld [vmem:[#allocation14 + $0x78] sm:$0xff]  ;;  %v1598_v13 = vld [vmem:[#allocation14 + $0x80] sm:$0xff] }
 0x34c   :  { %1410 = vrot.lane.b32.xlu1 %v1383_v18, %s2433_s26  ;;  %1412 = vrot.lane.b32.xlu0 %v1384_v63, %s2433_s26  ;;  %v2171_v51 = vpack.c.bf16 %v1597_v22, %v1596_v31  ;;  %v1599_v18 = vld [vmem:[#allocation14 + $0x88] sm:$0xff] }
 0x34d   :  { %v2174_v63 = vpack.c.bf16 %v1599_v18, %v1598_v13 }
 0x34e   :  { %v1342_v3 = vpop.permute.xlu1 %1341  ;;  %v1344_v38 = vpop.permute.xlu0 %1343 }
 0x34f   :  { %v1385_v50 = vsel %vm1379_vm4, %v1372_v34, %v1342_v3  ;;  %v1386_v9 = vsel %vm1379_vm4, %v3111_v8, %v1344_v38 }
 0x350   :  { %1414 = vrot.lane.b32.xlu1 %v1385_v50, %s2433_s26  ;;  %1416 = vrot.lane.b32.xlu0 %v1386_v9, %s2433_s26 }
 0x352   :  { %v1346_v20 = vpop.permute.xlu1 %1345  ;;  %v1348_v43 = vpop.permute.xlu0 %1347 }
 0x353   :  { %v1387_v6 = vsel %vm1379_vm4, %v3139_v47, %v1346_v20  ;;  %v1388_v58 = vsel %vm1379_vm4, %v1375_v61, %v1348_v43  ;;  %v1583_v61 = vld [vmem:[#allocation14 + $0x8] sm:$0xff] }
 0x354   :  { %1418 = vrot.lane.b32.xlu1 %v1387_v6, %s2433_s26  ;;  %1420 = vrot.lane.b32.xlu0 %v1388_v58, %s2433_s26  ;;  %v2150_v41 = vpack.c.bf16 %v1583_v61, %v1582_v12 }
 0x356   :  { %v1352_v8 = vpop.permute.xlu0 %1351  ;;  %2151 = vmatpush1.bf16.msra.mxu1 %v2150_v41 }
 0x357   :  { %v1390_v30 = vsel %vm1379_vm4, %v1377_v46, %v1352_v8  ;;  %2152 = vmatprep.subr.bf16.mxu1 %v2435_v23  ;;  %v1453_v46 = vld [vmem:[#allocation12 + $0x8] sm:$0xff]  ;;  %v1455_v8 = vld [vmem:[#allocation12 + $0x18] sm:$0xff] }
 0x358   :  { %1424 = vrot.lane.b32.xlu0 %v1390_v30, %s2433_s26  ;;  %v1452_v30 = vld [vmem:[#allocation12] sm:$0xff] }
 0x35a   :  { %v1350_v33 = vpop.permute.xlu1 %1349  ;;  %2154 = vmatpush1.bf16.msra.mxu1 %v2153_v62  ;;  %v373_v24 = vpop.permute.xlu0 %372 }
 0x35b   :  { %v1389_v47 = vsel %vm1379_vm4, %v1376_v29, %v1350_v33  ;;  %v1586_v29 = vld [vmem:[#allocation14 + $0x20] sm:$0xff]  ;;  %2155 = vmatprep.subr.bf16.mxu1 %v2435_v23  ;;  %v409_v19 = vsel %vm408_vm3, %v3080_v60, %v373_v24  ;;  %v1454_v33 = vld [vmem:[#allocation12 + $0x10] sm:$0xff] }
 0x35c   :  { %1422 = vrot.lane.b32.xlu1 %v1389_v47, %s2433_s26  ;;  %v2156_v14 = vpack.c.bf16 %v1587_v25, %v1586_v29  ;;  %v1458_v25 = vld [vmem:[#allocation12 + $0x30] sm:$0xff] }
 0x35e   :  { %v1354_v54 = vpop.permute.xlu1 %1353  ;;  %2157 = vmatpush1.bf16.msra.mxu1 %v2156_v14  ;;  %v377_v49 = vpop.permute.xlu0 %376 }
 0x35f   :  { %v1391_v11 = vsel %vm1379_vm4, %v1378_v37, %v1354_v54  ;;  %2158 = vmatprep.subr.bf16.mxu1 %v2435_v23  ;;  %v411_v41 = vsel %vm408_vm3, %v3087_v4, %v377_v49  ;;  %v1457_v37 = vld [vmem:[#allocation12 + $0x28] sm:$0xff]  ;;  %v1459_v54 = vld [vmem:[#allocation12 + $0x38] sm:$0xff] }
 0x360   :  { %1426 = vrot.lane.b32.xlu1 %v1391_v11, %s2433_s26  ;;  %v1456_v11 = vld [vmem:[#allocation12 + $0x20] sm:$0xff] }
 0x362   :  { %2160 = vmatpush1.bf16.msra.mxu1 %v2159_v36  ;;  %v375_v2 = vpop.permute.xlu1 %374  ;;  %v381_v3 = vpop.permute.xlu0 %380 }
 0x363   :  { %2161 = vmatprep.subr.bf16.mxu1 %v2435_v23  ;;  %v410_v47 = vsel %vm408_vm3, %v3098_v21, %v375_v2  ;;  %v413_v4 = vsel %vm408_vm3, %v3102_v26, %v381_v3  ;;  %v1467_v3 = vld [vmem:[#allocation12 + $0x78] sm:$0xff] }
 0x366   :  { %2163 = vmatpush1.bf16.msra.mxu1 %v2162_v5  ;;  %v379_v34 = vpop.permute.xlu1 %378  ;;  %v385_v50 = vpop.permute.xlu0 %384 }
 0x367   :  { %2164 = vmatprep.subr.bf16.mxu1 %v2435_v23  ;;  %v412_v21 = vsel %vm408_vm3, %v3117_v32, %v379_v34  ;;  %v415_v24 = vsel %vm408_vm3, %v3124_v59, %v385_v50  ;;  %v1465_v34 = vld [vmem:[#allocation12 + $0x68] sm:$0xff] }
 0x36a   :  { %2166 = vmatpush1.bf16.msra.mxu1 %v2165_v39  ;;  %v383_v38 = vpop.permute.xlu1 %382  ;;  %v3218_v20 = vpop.permute.xlu0 %388  ;;  %v1463_v39 = vld [vmem:[#allocation12 + $0x58] sm:$0xff] }
 0x36b   :  { %2167 = vmatprep.subr.bf16.mxu1 %v2435_v23  ;;  %v414_v31 = vsel %vm408_vm3, %v3134_v17, %v383_v38  ;;  %v1466_v38 = vld [vmem:[#allocation12 + $0x70] sm:$0xff] }
 0x36e   :  { %2169 = vmatpush1.bf16.msra.mxu1 %v2168_v57  ;;  %v3216_v9 = vpop.permute.xlu1 %386  ;;  %v1462_v57 = vld [vmem:[#allocation12 + $0x50] sm:$0xff] }
 0x36f   :  { %2170 = vmatprep.subr.bf16.mxu1 %v2435_v23 }
 0x372   :  { %2172 = vmatpush1.bf16.msra.mxu1 %v2171_v51  ;;  %v3220_v43 = vpop.permute.xlu1 %390 }
 0x373   :  { %2173 = vmatprep.subr.bf16.mxu1 %v2435_v23 }
 0x374   :  { %v3222_v6 = vpop.permute.xlu0 %392 }
 0x376   :  { %2175 = vmatpush1.bf16.msra.mxu1 %v2174_v63 }
 0x377   :  { %1646 = vmatprep.subr.mxu1 %v2434_v48 }
 0x37c   :  { %v3224_v58 = vpop.permute.xlu1 %394 }
 0x3b6   :  { %v1405_v15 = vpop.permute.xlu0 %1404 }
 0x3b7   :  { %v1440_v48 = vsel %vm1379_vm4, %v409_v19, %v1405_v15  ;;  %v1477_v10 = vmul.f32 %v1453_v46, %v1405_v15  ;;  %v1464_v19 = vld [vmem:[#allocation12 + $0x60] sm:$0xff]  ;;  %v416_v46 = vsel %vm408_vm3, %v3148_v35, %v3216_v9  ;;  %v1471_v35 = vld [vmem:[#allocation12 + $0x98] sm:$0xff] }
 0x3b8   :  { %v1476_v40 = vmul.f32 %v1452_v30, %v1440_v48  ;;  %v1468_v9 = vld [vmem:[#allocation12 + $0x80] sm:$0xff] }
 0x3ba   :  { %v1407_v12 = vpop.permute.xlu1 %1406  ;;  %v1409_v61 = vpop.permute.xlu0 %1408 }
 0x3bb   :  { %v1441_v56 = vsel %vm1379_vm4, %v410_v47, %v1407_v12  ;;  %v1479_v23 = vmul.f32 %v1455_v8, %v1407_v12  ;;  %v1442_v29 = vsel %vm1379_vm4, %v411_v41, %v1409_v61  ;;  %v1481_v36 = vmul.f32 %v1457_v37, %v1409_v61 }
 0x3bc   :  { %v1478_v60 = vmul.f32 %v1454_v33, %v1441_v56  ;;  %v1480_v5 = vmul.f32 %v1456_v11, %v1442_v29  ;;  %v417_v56 = vsel %vm408_vm3, %v3127_v27, %v3218_v20  ;;  %v419_v27 = vsel %vm408_vm3, %v3161_v0, %v3222_v6 }
 0x3bd   :  { %v2123_v62 = vpack.c.bf16 %v1479_v23, %v1477_v10  ;;  %v1469_v23 = vld [vmem:[#allocation12 + $0x88] sm:$0xff] }
 0x3be   :  { %v2125_v14 = vpack.c.bf16 %v1478_v60, %v1476_v40  ;;  %v1411_v45 = vpop.permute.xlu1 %1410  ;;  %v1413_v28 = vpop.permute.xlu0 %1412  ;;  %v1470_v40 = vld [vmem:[#allocation12 + $0x90] sm:$0xff]  ;;  %v418_v60 = vsel %vm408_vm3, %v3151_v7, %v3220_v43  ;;  %v420_v7 = vsel %vm408_vm3, %v3168_v42, %v3224_v58  ;;  %v1500_v42 = vld [vmem:[%s3324_s7] sm:$0x7] }
 0x3bf   :  { %v1443_v1 = vsel %vm1379_vm4, %v412_v21, %v1411_v45  ;;  %v1483_v52 = vmul.f32 %v1459_v54, %v1411_v45  ;;  %2124 = vmatprep.subr.bf16.mxu0 %v2123_v62  ;;  %v1444_v32 = vsel %vm1379_vm4, %v413_v4, %v1413_v28  ;;  %v1485_v18 = vmul.f32 %v1461_v53, %v1413_v28  ;;  %v1472_v45 = vld [vmem:[#allocation12 + $0xa0] sm:$0xff]  ;;  %v1600_v58 = vld [vmem:[#allocation14 + $0x90] sm:$0x3f] }
 0x3c0   :  { %v1482_v55 = vmul.f32 %v1458_v25, %v1443_v1  ;;  %2126 = vmatpush1.bf16.msra.mxu0 %v2125_v14  ;;  %v1484_v2 = vmul.f32 %v1460_v16, %v1444_v32  ;;  %v1473_v25 = vld [vmem:[#allocation12 + $0xa8] sm:$0xff]  ;;  %v1475_v14 = vld [vmem:[#allocation12 + $0xb8] sm:$0x3f]  ;;  %v1474_v1 = vld [vmem:[#allocation12 + $0xb0] sm:$0x3f]  ;;  %1900 = vmatpush1.msk.msra.mxu1 %vm180_vm2, %v1600_v58 }
 0x3c1   :  { %v2127_v44 = vpack.c.bf16 %v1483_v52, %v1481_v36  ;;  %v2225_v32 = vld [vmem:[#allocation6 + $0x18] sm:$0xff] }
 0x3c2   :  { %v2129_v22 = vpack.c.bf16 %v1482_v55, %v1480_v5  ;;  %v1415_v51 = vpop.permute.xlu1 %1414  ;;  %v1417_v13 = vpop.permute.xlu0 %1416 }
 0x3c3   :  { %v1445_v63 = vsel %vm1379_vm4, %v414_v31, %v1415_v51  ;;  %v1487_v26 = vmul.f32 %v1463_v39, %v1415_v51  ;;  %2128 = vmatprep.subr.bf16.mxu0 %v2127_v44  ;;  %v1446_v17 = vsel %vm1379_vm4, %v415_v24, %v1417_v13  ;;  %v1489_v48 = vmul.f32 %v1465_v34, %v1417_v13  ;;  %v2227_v13 = vld [vmem:[#allocation6 + $0x28] sm:$0xff] }
 0x3c4   :  { %v1486_v49 = vmul.f32 %v1462_v57, %v1445_v63  ;;  %2130 = vmatpush1.bf16.msra.mxu0 %v2129_v22  ;;  %v1488_v50 = vmul.f32 %v1464_v19, %v1446_v17  ;;  %v1771_v57 = vand.u32 2147483647, %v2225_v32  ;;  %v2226_v22 = vld [vmem:[#allocation6 + $0x20] sm:$0xff] }
 0x3c5   :  { %v2131_v15 = vpack.c.bf16 %v1487_v26, %v1485_v18  ;;  %v1772_v51 = vand.u32 2147483647, %v2226_v22  ;;  %v1773_v18 = vand.u32 2147483647, %v2227_v13  ;;  %v3377_v63 = vld [vmem:[#allocation25_spill] sm:$0xff] }
 0x3c6   :  { %v2133_v8 = vpack.c.bf16 %v1486_v49, %v1484_v2  ;;  %v1419_v30 = vpop.permute.xlu1 %1418  ;;  %v1421_v12 = vpop.permute.xlu0 %1420  ;;  %v1785_v31 = vsel %vm425_vm0, %v1771_v57, 0.0 }
 0x3c7   :  { %v1447_v33 = vsel %vm1379_vm4, %v416_v46, %v1419_v30  ;;  %v1491_v59 = vmul.f32 %v1467_v3, %v1419_v30  ;;  %2132 = vmatprep.subr.bf16.mxu0 %v2131_v15  ;;  %v1448_v41 = vsel %vm1379_vm4, %v417_v56, %v1421_v12  ;;  %v1493_v62 = vmul.f32 %v1469_v23, %v1421_v12  ;;  %v1680_v3 = vld [vmem:[%s3324_s7 + $0x8] sm:$0x7]  ;;  %v2228_v12 = vld [vmem:[#allocation6 + $0x30] sm:$0xff] }
 0x3c8   :  { %v1490_v47 = vmul.f32 %v1466_v38, %v1447_v33  ;;  %2134 = vmatpush1.bf16.msra.mxu0 %v2133_v8  ;;  %v1492_v20 = vmul.f32 %v1468_v9, %v1448_v41  ;;  %v1786_v26 = vadd.f32 %v1785_v31, %v3377_v63  ;;  %v1787_v24 = vsel %vm425_vm0, %v1772_v51, 0.0  ;;  %v2230_v9 = vld [vmem:[#allocation6 + $0x40] sm:$0xff] }
 0x3c9   :  { %v2135_v61 = vpack.c.bf16 %v1491_v59, %v1489_v48  ;;  %v1789_v49 = vsel %vm425_vm0, %v1773_v18, 0.0  ;;  %v1602_v15 = vstv %s3325_s8  ;;  %v1698_v17 = vsub.f32 1.0, %v1680_v3 }
 0x3ca   :  { %v2137_v10 = vpack.c.bf16 %v1490_v47, %v1488_v50  ;;  %v1425_v37 = vpop.permute.xlu0 %1424  ;;  %v1788_v2 = vadd.f32 %v1787_v24, %v1786_v26  ;;  %v1681_v30 = vmul.f32 2.0, %v1680_v3  ;;  %v1776_v41 = vand.u32 2147483647, %v2230_v9 }
 0x3cb   :  { %2136 = vmatprep.subr.bf16.mxu0 %v2135_v61  ;;  %v1450_v28 = vsel %vm1379_vm4, %v419_v27, %v1425_v37  ;;  %v1497_v4 = vmul.f32 %v1473_v25, %v1425_v37  ;;  %v1774_v61 = vand.u32 2147483647, %v2228_v12  ;;  %v2231_v37 = vld [vmem:[#allocation6 + $0x48] sm:$0xff] }
 0x3cc   :  { %2138 = vmatpush1.bf16.msra.mxu0 %v2137_v10  ;;  %v1496_v0 = vmul.f32 %v1472_v45, %v1450_v28  ;;  %v1790_v34 = vadd.f32 %v1789_v49, %v1788_v2  ;;  %v1682_v33 = vsub.f32 1.0, %v1681_v30  ;;  %v2229_v10 = vld [vmem:[#allocation6 + $0x38] sm:$0xff] }
 0x3cd   :  { %v1775_v56 = vand.u32 2147483647, %v2229_v10  ;;  %v1791_v23 = vsel %vm425_vm0, %v1774_v61, 0.0 }
 0x3ce   :  { %v1423_v54 = vpop.permute.xlu1 %1422 }
 0x3cf   :  { %v1449_v11 = vsel %vm1379_vm4, %v418_v60, %v1423_v54  ;;  %v1495_v29 = vmul.f32 %v1471_v35, %v1423_v54  ;;  %v1792_v35 = vadd.f32 %v1791_v23, %v1790_v34  ;;  %v1777_v54 = vand.u32 2147483647, %v2231_v37 }
 0x3d0   :  { %v1494_v21 = vmul.f32 %v1470_v40, %v1449_v11  ;;  %v1793_v40 = vsel %vm425_vm0, %v1775_v56, 0.0 }
 0x3d1   :  { %v2139_v36 = vpack.c.bf16 %v1495_v29, %v1493_v62  ;;  %v1794_v60 = vadd.f32 %v1793_v40, %v1792_v35  ;;  %v1795_v62 = vsel %vm425_vm0, %v1776_v41, 0.0  ;;  %v2232_v29 = vld [vmem:[#allocation6 + $0x50] sm:$0xff] }
 0x3d2   :  { %v2141_v43 = vpack.c.bf16 %v1494_v21, %v1492_v20  ;;  %v1427_v52 = vpop.permute.xlu1 %1426  ;;  %v1778_v27 = vand.u32 2147483647, %v2232_v29  ;;  %v1797_v20 = vsel %vm425_vm0, %v1777_v54, 0.0  ;;  %v2233_v21 = vld [vmem:[#allocation6 + $0x58] sm:$0xff] }
 0x3d3   :  { %v1451_v5 = vsel %vm1379_vm4, %v420_v7, %v1427_v52  ;;  %v1499_v55 = vmul.f32 %v1475_v14, %v1427_v52  ;;  %2140 = vmatprep.subr.bf16.mxu0 %v2139_v36  ;;  %v1796_v11 = vadd.f32 %v1795_v62, %v1794_v60  ;;  %v1779_v14 = vand.u32 2147483647, %v2233_v21 }
 0x3d4   :  { %v1498_v6 = vmul.f32 %v1474_v1, %v1451_v5  ;;  %2142 = vmatpush1.bf16.msra.mxu0 %v2141_v43  ;;  %v1799_v45 = vsel %vm425_vm0, %v1778_v27, 0.0 }
 0x3d5   :  { %v2143_v53 = vpack.c.bf16 %v1499_v55, %v1497_v4  ;;  %v1798_v25 = vadd.f32 %v1797_v20, %v1796_v11  ;;  %v1801_v43 = vsel %vm425_vm0, %v1779_v14, 0.0 }
 0x3d6   :  { %v2146_v39 = vpack.c.bf16 %v1498_v6, %v1496_v0 }
 0x3d7   :  { %2145 = vmatprep.subr.msk.bf16.mxu0 %vm2144_vm6, %v2143_v53  ;;  %v1800_v7 = vadd.f32 %v1799_v45, %v1798_v25 }
 0x3d8   :  { %2148 = vmatpush1.bf16.msk.msra.mxu0 %vm2144_vm6, %v2146_v39 }
 0x3d9   :  { %v1802_v0 = vadd.f32 %v1801_v43, %v1800_v7 }
 0x3db   :  { %1899 = vmatmul.mubr.msk.f32.vlgmr.msra.gmra.mrb[28].mxu0 %vm1501_vm7, %v1500_v42 }
 0x4ae   :  { %v1577_v44 = vpop.f32.mrb[28].mxu0 }
 0x4af   :  { %v1579_v16 = vpop.f32.mrb[29].mxu0 }
 0x4b0   :  { %1901 = vmatprep.mubr.msk.f32.mxu1 %vm1603_vm8, %v1579_v16 }
 0x4b1   :  { %1675 = vmatmul.mubr.f32.vlgmr.msra.gmra.mrb[20].mxu1 %v1577_v44 }
 0x584   :  { %v1676_v19 = vpop.f32.mrb[20].mxu1 }
 0x585   :  { %v1677_v38 = vadd.f32 %v1676_v19, %v1602_v15  ;;  %v1678_v46 = vpop.f32.mrb[21].mxu1 }
 0x587   :  { %vm1697_vm9 = vcmp.gt.f32.partialorder %v1677_v38, 0.0  ;;  %v1902_v48 = vclamps-f32 %v1677_v38, 0.5 }
 0x588   :  { %v1699_v8 = vsel %vm1697_vm9, %v1680_v3, %v1698_v17 }
 0x589   :  { %1726 = vrot.lane.b32.xlu1 %v1699_v8, %s2437_s23  ;;  %1712 = vrot.lane.b32.xlu0 %v1699_v8, %s2438_s24  ;;  %v1685_v59 = vmul.f32 %v1902_v48, %v1682_v33  ;;  %v1701_v47 = vsel %vm1700_vm11, %v1699_v8, 0.0 }
 0x58b   :  { %v1687_v50 = vsel %vm1686_vm10, %v1685_v59, 0.0 }
 0x58d   :  { %1754 = vrot.lane.b32.xlu1 %v1699_v8, %s2439_s5  ;;  %1740 = vrot.lane.b32.xlu0 %v1699_v8, %s2440_s20 }
 0x5ac   :  { %1688 = vadd.xlane.f32.xlu0 %v1687_v50 }
 0x5b1   :  { %1702 = vadd.xlane.f32.xlu1 %v1701_v47 }
 0x5fb   :  { %v1727_v28 = vpop.permute.xlu1 %1726  ;;  %v1713_v36 = vpop.permute.xlu0 %1712 }
 0x5fc   :  { %v1715_v1 = vsel %vm1700_vm11, %v1713_v36, 0.0  ;;  %v1729_v4 = vsel %vm1700_vm11, %v1727_v28, 0.0 }
 0x5fd   :  { %1716 = vadd.xlane.f32.xlu0 %v1715_v1 }
 0x5ff   :  { %v1741_v52 = vpop.permute.xlu0 %1740  ;;  %v1755_v55 = vpop.permute.xlu1 %1754 }
 0x600   :  { %v1743_v5 = vsel %vm1700_vm11, %v1741_v52, 0.0  ;;  %v1757_v6 = vsel %vm1700_vm11, %v1755_v55, 0.0 }
 0x601   :  { %1744 = vadd.xlane.f32.xlu1 %v1743_v5  ;;  %1730 = vadd.xlane.f32.xlu0 %v1729_v4 }
 0x605   :  { %1803 = vadd.xlane.f32.xlu1 %v1802_v0  ;;  %1758 = vadd.xlane.f32.xlu0 %v1757_v6 }
 0x639   :  { %v1689_v53 = vpop.xlane.xlu0 %1688 }
 0x63a   :  { %v1690_v39 = vrot.slane %v1689_v53, 4 }
 0x63c   :  { %v1691_v42 = vadd.f32 %v1690_v39, %v1689_v53 }
 0x63e   :  { %v1692_v58 = vrot.slane %v1691_v42, 2  ;;  %v1703_v44 = vpop.xlane.xlu1 %1702 }
 0x63f   :  { %v1704_v16 = vrot.slane %v1703_v44, 4 }
 0x640   :  { %v1693_v32 = vadd.f32 %v1692_v58, %v1691_v42 }
 0x641   :  { %v1705_v57 = vadd.f32 %v1704_v16, %v1703_v44 }
 0x642   :  { %v1694_v31 = vrot.slane %v1693_v32, 1 }
 0x643   :  { %v1706_v22 = vrot.slane %v1705_v57, 2 }
 0x644   :  { %v1695_v51 = vadd.f32 %v1694_v31, %v1693_v32 }
 0x645   :  { %v1707_v13 = vadd.f32 %v1706_v22, %v1705_v57 }
 0x646   :  { %2188 = vpush %v1695_v51 }
 0x647   :  { %v1708_v18 = vrot.slane %v1707_v13, 1 }
 0x649   :  { %v1709_v63 = vadd.f32 %v1708_v18, %v1707_v13 }
 0x64b   :  { %2190 = vpush %v1709_v63 }
 0x677   :  { %s2189_s7 = spop %2188 }
 0x678   :  { %s1812_s30 = smul.f32 0.022222223, %s2189_s7 }
 0x67c   :  { %s2191_s8 = spop %2190 }
 0x68a   :  { %v1717_v26 = vpop.xlane.xlu0 %1716 }
 0x68b   :  { %v1718_v24 = vrot.slane %v1717_v26, 4 }
 0x68d   :  { %v1719_v2 = vadd.f32 %v1718_v24, %v1717_v26 }
 0x68e   :  { %v1745_v49 = vpop.xlane.xlu1 %1744  ;;  %v1731_v34 = vpop.xlane.xlu0 %1730 }
 0x68f   :  { %v1720_v3 = vrot.slane %v1719_v2, 2  ;;  %v1746_v15 = vrot.slane %v1745_v49, 4  ;;  %v1732_v19 = vrot.slane %v1731_v34, 4 }
 0x691   :  { %v1747_v17 = vadd.f32 %v1746_v15, %v1745_v49  ;;  %v1733_v38 = vadd.f32 %v1732_v19, %v1731_v34  ;;  %v1721_v46 = vadd.f32 %v1720_v3, %v1719_v2 }
 0x692   :  { %v1804_v8 = vpop.xlane.xlu1 %1803  ;;  %v1759_v30 = vpop.xlane.xlu0 %1758 }
 0x693   :  { %v1748_v48 = vrot.slane %v1747_v17, 2  ;;  %v1734_v33 = vrot.slane %v1733_v38, 2  ;;  %v1805_v59 = vrot.slane %v1804_v8, 4  ;;  %v1760_v50 = vrot.slane %v1759_v30, 4 }
 0x694   :  { %v1722_v47 = vrot.slane %v1721_v46, 1 }
 0x695   :  { %v1806_v12 = vadd.f32 %v1805_v59, %v1804_v8  ;;  %v1761_v61 = vadd.f32 %v1760_v50, %v1759_v30  ;;  %v1735_v10 = vadd.f32 %v1734_v33, %v1733_v38  ;;  %v1749_v56 = vadd.f32 %v1748_v48, %v1747_v17 }
 0x696   :  { %v1723_v23 = vadd.f32 %v1722_v47, %v1721_v46 }
 0x697   :  { %v1807_v35 = vrot.slane %v1806_v12, 2  ;;  %v1762_v9 = vrot.slane %v1761_v61, 2  ;;  %v1736_v41 = vrot.slane %v1735_v10, 1  ;;  %v1750_v40 = vrot.slane %v1749_v56, 1 }
 0x698   :  { %2192 = vpush %v1723_v23 }
 0x699   :  { %v1808_v60 = vadd.f32 %v1807_v35, %v1806_v12  ;;  %v1763_v37 = vadd.f32 %v1762_v9, %v1761_v61  ;;  %v1737_v54 = vadd.f32 %v1736_v41, %v1735_v10  ;;  %v1751_v62 = vadd.f32 %v1750_v40, %v1749_v56 }
 0x69b   :  { %2194 = vpush %v1737_v54  ;;  %v1764_v11 = vrot.slane %v1763_v37, 1  ;;  %v1809_v29 = vrot.slane %v1808_v60, 1 }
 0x69c   :  { %2196 = vpush %v1751_v62 }
 0x69d   :  { %v1765_v27 = vadd.f32 %v1764_v11, %v1763_v37  ;;  %v1810_v20 = vadd.f32 %v1809_v29, %v1808_v60 }
 0x69f   :  { %2198 = vpush %v1765_v27 }
 0x6a0   :  { %2200 = vpush %v1810_v20 }
 0x6c9   :  { %s2193_s27 = spop %2192 }
 0x6ca   :  { %s1725_s2 = smin.f32 %s2193_s27, %s2191_s8 }
 0x6cc   :  { %s2195_s18 = spop %2194 }
 0x6cd   :  { %s1739_s28 = smin.f32 %s2195_s18, %s1725_s2  ;;  %s2197_s29 = spop %2196 }
 0x6ce   :  { %s1753_s3 = smin.f32 %s2197_s29, %s1739_s28 }
 0x6d0   :  { %s2199_s16 = spop %2198 }
 0x6d1   :  { %s1767_s11 = smin.f32 %s2199_s16, %s1753_s3  ;;  %s2201_s12 = spop %2200 }
 0x6d2   :  { %1819 = sst [smem:[#allocation16]] %s1767_s11  ;;  %s1813_s13 = smul.f32 20.0, %s2201_s12 }
 0x6d3   :  { %2397 = shalt.err (!%p2394_p2)
}
 0x6d4   :  { %s2441_s1 = smov [#allocation16]   ;;  %s1814_s21 = smul.f32 0.00032552084, %s1813_s13 }
 0x6d5   :  { %1835 = dma.smem_to_hbm %s2441_s1, 16, %s3327_s10, [#allocation17]  }
 0x6d6   :  { %s1815_s22 = sadd.f32 %s1814_s21, %s1812_s30  ;;  %s2398_s5 = scalar_lea.hbm %s3326_s9, 16 }
 0x6d7   :  { %p2399_p3 = scmp.ne.s32.totalorder %s3326_s9, %s2398_s5  ;;  %p2402_p4 = scmp.lt.u32.totalorder %s2398_s5, %s3326_s9 }
 0x6d8   :  { %1817 = sst [smem:[#allocation15]] %s1815_s22 }
 0x6d9   :  { %p2404_p5 = pnand %p2402_p4, %p2399_p3 }
 0x6db   :  { %2407 = shalt.err (!%p2404_p5)
}
 0x6dc   :  { %s2442_s2 = smov [#allocation15]  }
 0x6dd   :  { %1827 = dma.smem_to_hbm %s2442_s2, 16, %s3326_s9, [#allocation5]  }
 0x6de   :  { %2416 = dma.done.wait [#allocation5], 16  }
 0x6df   :  { %2417 = vsyncadd [#allocation5], 4294967280 }
 0x6e0   :  { %2418 = dma.done.wait [#allocation17], 16  }
 0x6e1   :  { %2419 = vsyncadd [#allocation17], 4294967280 }
 0x6e2   :  { %1842 = sfence }
 0x6e3   :  { %1843 = vsyncpa [#allocation4], 1 }
 0x6e4   :  { %1844 = vsyncpa [#allocation7], 1 }
 0x6e5   :  { %1845 = vsyncpa [#allocation10], 1 }
 0x6e6   :  { %1846 = vsyncpa [#allocation13], 1 }
 0x6e7   :  { %1847 = vsyncpa [#allocation5], 1 }
 0x6e8   :  { %1848 = vsyncpa [#allocation17], 1 }

</bundles_post_ra>
